<compile_context>
chip_gen: v5e
topology: v5e:2x2
jax: 0.10.0
libtpu: 0.0.40
codegen_flags: <defaults>
</compile_context>

<pallas_src>
import functools

import numpy as np
import jax
import jax.numpy as jnp
from jax import lax
from jax.experimental import pallas as pl
from jax.experimental.pallas import tpu as pltpu


# ------------------------- fused Pallas kernel -------------------------

def _sep_up1_kernel(N, HP, H2, W2, Cin, Cout, eps,
                    x1dp_ref, x2pad_ref, wup_ref, bplane_ref,
                    wdl_ref, wpw_ref, bt_ref, g_ref, b_ref, pool_ref,
                    o_ref, dw_ref):
    WC = W2 * Cin
    f32 = jnp.float32

    # 1) ConvTranspose2d(k=2,s=2) + row-parity + 2x upsample + F.pad placement + channel
    #    interleave: ONE matmul into the pre-padded lane layout, added to host-placed x2.
    up = jnp.dot(x1dp_ref[...], wup_ref[...],
                 precision=lax.Precision.HIGHEST, preferred_element_type=f32)
    combined = x2pad_ref[...] + bplane_ref[...] + up          # (N*HP, (W2+2)*Cin)

    # 2) Depthwise 3x3 at full 128-lane occupancy. Weight-row broadcasts hoisted out of
    #    the per-image unroll (JAX does not CSE broadcast_in_dim).
    wdb = [jnp.broadcast_to(wdl_ref[t:t + 1, :], (H2, WC)) for t in range(9)]
    for n in range(N):                                        # static unroll (small batch)
        xp = combined[n * HP: n * HP + H2 + 2, :]             # (H2+2, (W2+2)*Cin)
        acc = None
        for kw in range(3):
            sh = xp[:, kw * Cin: kw * Cin + WC]               # one lane shift per kw
            for kh in range(3):                               # cheap sublane slices for kh
                term = sh[kh:kh + H2, :] * wdb[kh * 3 + kw]
                acc = term if acc is None else acc + term
        dw_ref[n * H2:(n + 1) * H2, :] = acc                  # sublane-aligned store

    # 3) ONE batched pointwise matmul over the whole batch (+ folded depthwise bias).
    pw = jnp.dot(dw_ref[...], wpw_ref[...],
                 precision=lax.Precision.HIGHEST, preferred_element_type=f32) + bt_ref[...]

    # 4) BatchNorm2d (training-mode, two-pass batch stats) + ReLU, fused into the store.
    pool = pool_ref[...]                                      # (128,128): same-channel lane pool
    inv_m = 1.0 / float(N * H2 * W2)
    mean_l = jnp.dot(jnp.sum(pw, axis=0, keepdims=True), pool,
                     precision=lax.Precision.HIGHEST, preferred_element_type=f32) * inv_m
    cent = pw - mean_l
    var_l = jnp.dot(jnp.sum(cent * cent, axis=0, keepdims=True), pool,
                    precision=lax.Precision.HIGHEST, preferred_element_type=f32) * inv_m
    scale = g_ref[...] * lax.rsqrt(var_l + eps)
    o_ref[...] = jnp.maximum(cent * scale + b_ref[...], 0.0)


# ------------------------- one-time weight preparation -------------------------

def prepare_sep_up_1(params, x1_shape, x2_shape, eps=1e-5):
    """Hoisted, cacheable weight prep: run ONCE per parameter set / shape."""
    N, Cin, H1, W1 = x1_shape
    C2 = Cin // 2
    _, _, H2, W2 = x2_shape
    Cout = int(np.asarray(params['w_pw']).shape[1])
    H_up, W_up = 2 * H1, 2 * W1
    diffY, diffX = H2 - H_up, W2 - W_up
    assert diffY >= 0 and diffX >= 0, "x2 must be at least as large as the upsampled x1"
    pt = 1 + diffY // 2                       # top offset inside the halo-padded plane
    pleft = 1 + diffX // 2                    # left pixel offset inside the padded plane
    HP = ((H2 + 2 + 7) // 8) * 8              # per-image padded-row stride (sublane aligned)
    L = (W2 + 2) * Cin                        # padded lane width

    f32 = np.float32
    w_up = np.asarray(params['w_up'], f32)    # (Cin, C2, 2, 2)
    b_up = np.asarray(params['b_up'], f32)    # (C2,)
    w_dw = np.asarray(params['w_dw'], f32)    # (3, 3, Cin)
    b_dw = np.asarray(params['b_dw'], f32)    # (Cin,)
    w_pw = np.asarray(params['w_pw'], f32)    # (Cin, Cout)
    b_pw = np.asarray(params['b_pw'], f32)    # (Cout,)
    gamma = np.asarray(params['gamma'], f32)  # (Cout,)
    beta = np.asarray(params['beta'], f32)    # (Cout,)

    # Merged ConvTranspose weight: rows = parity-split LHS columns (p, w, i),
    # columns = padded-plane lanes (pixel, channel-slot); up branch lands in slots [C2,Cin).
    wup = np.zeros((2, W1, Cin, L), f32)
    for p in range(2):                        # output-row parity (kh)
        for kw in range(2):
            for w in range(W1):
                px = pleft + 2 * w + kw
                wup[p, w, :, px * Cin + C2: px * Cin + Cin] = w_up[:, :, p, kw]
    wup = wup.reshape(2 * W1 * Cin, L)

    # ConvTranspose bias plane (only where the F.pad'ed up branch actually covers).
    bplane = np.zeros((N, HP, W2 + 2, Cin), f32)
    bplane[:, pt:pt + H_up, pleft:pleft + W_up, C2:] = b_up
    bplane = bplane.reshape(N * HP, L)

    # Depthwise weight, lane-tiled to the interleaved per-pixel layout.
    wdl = np.tile(w_dw.reshape(9, 1, Cin), (1, W2, 1)).reshape(9, W2 * Cin)

    # Pointwise as block-diagonal matmul; depthwise bias folded into its bias.
    wpw = np.kron(np.eye(W2, dtype=f32), w_pw)                        # (W2*Cin, W2*Cout)
    bt = np.tile(b_pw + b_dw @ w_pw, W2).reshape(1, W2 * Cout)

    gamma_l = np.tile(gamma, W2).reshape(1, W2 * Cout)
    beta_l = np.tile(beta, W2).reshape(1, W2 * Cout)
    pool = np.kron(np.ones((W2, W2), f32), np.eye(Cout, dtype=f32))   # channel-pool matrix

    weights = tuple(jnp.asarray(a) for a in
                    (wup, bplane, wdl, wpw, bt, gamma_l, beta_l, pool))
    meta = dict(N=N, Cin=Cin, C2=C2, H1=H1, W1=W1, H2=H2, W2=W2, Cout=Cout,
                HP=HP, pt=pt, pleft=pleft, eps=float(eps))
    return weights, meta


def make_sep_up_1(params, x1_shape, x2_shape, eps=1e-5):
    """Returns a jitted forward(x1_nchw, x2_nchw) -> (N, Cout, H2, W2)."""
    (wup, bplane, wdl, wpw, bt, gamma_l, beta_l, pool), m = \
        prepare_sep_up_1(params, x1_shape, x2_shape, eps)
    N, Cin, C2 = m['N'], m['Cin'], m['C2']
    H1, W1, H2, W2, Cout = m['H1'], m['W1'], m['H2'], m['W2'], m['Cout']
    HP, pt, eps_f = m['HP'], m['pt'], m['eps']
    L = (W2 + 2) * Cin
    f32 = jnp.float32

    kernel = functools.partial(_sep_up1_kernel, N, HP, H2, W2, Cin, Cout, eps_f)

    def spec(a):
        return pl.BlockSpec(a.shape, lambda i: (0, 0))

    @jax.jit
    def forward(x1, x2):
        # ---- activation layout plumbing (fused by XLA ahead of the pallas_call) ----
        # x2 -> pre-padded, channel-interleaved plane (x2 occupies channel slots [0, C2)).
        x2n = jnp.transpose(x2, (0, 2, 3, 1)).astype(f32)               # (N, H2, W2, C2)
        x2p = jnp.zeros((N, HP, W2 + 2, Cin), f32)
        x2p = x2p.at[:, 1:H2 + 1, 1:W2 + 1, :C2].set(x2n)
        x2pad = x2p.reshape(N * HP, L)

        # x1 -> row-duplicated, parity-split LHS aligned with the padded-row layout.
        x1n = jnp.transpose(x1, (0, 2, 3, 1)).astype(f32).reshape(N, H1, W1 * Cin)
        blk = jnp.zeros((N, H1, 2, 2, W1 * Cin), f32)
        blk = blk.at[:, :, 0, 0, :].set(x1n)                            # even rows -> kh=0 half
        blk = blk.at[:, :, 1, 1, :].set(x1n)                            # odd rows  -> kh=1 half
        blk = blk.reshape(N, 2 * H1, 2 * W1 * Cin)
        x1f = jnp.zeros((N, HP, 2 * W1 * Cin), f32)
        x1f = x1f.at[:, pt:pt + 2 * H1, :].set(blk)
        x1dp = x1f.reshape(N * HP, 2 * W1 * Cin)

        inputs = (x1dp, x2pad, wup, bplane, wdl, wpw, bt, gamma_l, beta_l, pool)
        out2d = pl.pallas_call(
            kernel,
            out_shape=jax.ShapeDtypeStruct((N * H2, W2 * Cout), f32),
            grid=(1,),
            in_specs=[spec(a) for a in inputs],
            out_specs=pl.BlockSpec((N * H2, W2 * Cout), lambda i: (0, 0)),
            scratch_shapes=[pltpu.VMEM((N * H2, W2 * Cin), f32)],
            compiler_params=pltpu.CompilerParams(dimension_semantics=("arbitrary",)),
        )(*inputs)
        return jnp.transpose(out2d.reshape(N, H2, W2, Cout), (0, 3, 1, 2))   # NCHW

    return forward


# ------------------------- pure-JAX reference -------------------------

def ref_forward(x1, x2, params, eps=1e-5):
    w_up, b_up = params['w_up'], params['b_up']
    w_dw, b_dw = params['w_dw'], params['b_dw']
    w_pw, b_pw = params['w_pw'], params['b_pw']
    gamma, beta = params['gamma'], params['beta']
    N, Cin, H1, W1 = x1.shape
    C2 = w_up.shape[1]

    y = jnp.einsum('nihw,iokl->nohkwl', x1, w_up)
    y = y.reshape(N, C2, 2 * H1, 2 * W1) + b_up[None, :, None, None]
    dY, dX = x2.shape[2] - y.shape[2], x2.shape[3] - y.shape[3]
    y = jnp.pad(y, ((0, 0), (0, 0), (dY // 2, dY - dY // 2),
                    (dX // 2, dX - dX // 2)))
    xc = jnp.concatenate([x2, y], axis=1)

    C = xc.shape[1]
    w_dw_oihw = jnp.transpose(w_dw, (2, 0, 1))[:, None, :, :]       # (C, 1, 3, 3)
    dw = lax.conv_general_dilated(xc, w_dw_oihw, (1, 1), ((1, 1), (1, 1)),
                                  feature_group_count=C,
                                  dimension_numbers=('NCHW', 'OIHW', 'NCHW'))
    dw = dw + b_dw[None, :, None, None]
    pw = jnp.einsum('nchw,cd->ndhw', dw, w_pw) + b_pw[None, :, None, None]

    mean = pw.mean(axis=(0, 2, 3))
    var = ((pw - mean[None, :, None, None]) ** 2).mean(axis=(0, 2, 3))
    norm = (pw - mean[None, :, None, None]) * lax.rsqrt(var + eps)[None, :, None, None]
    out = gamma[None, :, None, None] * norm + beta[None, :, None, None]
    return jnp.maximum(out, 0.0)


# ------------------------- main -------------------------

if __name__ == "__main__":
    jax.config.update('jax_default_matmul_precision', 'highest')

    N, Cin, Cout = 2, 8, 8          # SepUp_1(in_channels=8, out_channels=8)
    H1 = W1 = 8                     # x1 spatial (pre-upsample)
    H2 = W2 = 16                    # x2 spatial (W2*Cin = W2*Cout = 128 -> lane-dense)
    C2 = Cin // 2

    key = jax.random.PRNGKey(0)
    ks = jax.random.split(key, 10)
    x1 = jax.random.normal(ks[0], (N, Cin, H1, W1), jnp.float32)
    x2 = jax.random.normal(ks[1], (N, C2, H2, W2), jnp.float32)

    params = dict(
        w_up=0.3 * jax.random.normal(ks[2], (Cin, C2, 2, 2), jnp.float32),
        b_up=0.1 * jax.random.normal(ks[3], (C2,), jnp.float32),
        w_dw=0.3 * jax.random.normal(ks[4], (3, 3, Cin), jnp.float32),
        b_dw=0.1 * jax.random.normal(ks[5], (Cin,), jnp.float32),
        w_pw=0.3 * jax.random.normal(ks[6], (Cin, Cout), jnp.float32),
        b_pw=0.1 * jax.random.normal(ks[7], (Cout,), jnp.float32),
        gamma=1.0 + 0.1 * jax.random.normal(ks[8], (Cout,), jnp.float32),
        beta=0.1 * jax.random.normal(ks[9], (Cout,), jnp.float32),
    )

    forward = make_sep_up_1(params, x1.shape, x2.shape)      # one-time weight prep + jit
    out = jax.block_until_ready(forward(x1, x2))
    ref = jax.block_until_ready(ref_forward(x1, x2, params))

    assert out.shape == (N, Cout, H2, W2), out.shape
    err = float(jnp.max(jnp.abs(out - ref)))
    if err > 5e-3:
        raise AssertionError(f"Pallas / reference mismatch, max abs err = {err}")
    print("KERNEL_OK")
</pallas_src>

<mosaic_0001>
module attributes {stable_mosaic.version = 11 : i64} {
  func.func @_sep_up1_kernel(%arg0: i32, %arg1: memref<48x128xf32, #tpu.memory_space<vmem>>, %arg2: memref<48x144xf32, #tpu.memory_space<vmem>>, %arg3: memref<128x144xf32, #tpu.memory_space<vmem>>, %arg4: memref<48x144xf32, #tpu.memory_space<vmem>>, %arg5: memref<9x128xf32, #tpu.memory_space<vmem>>, %arg6: memref<128x128xf32, #tpu.memory_space<vmem>>, %arg7: memref<1x128xf32, #tpu.memory_space<vmem>>, %arg8: memref<1x128xf32, #tpu.memory_space<vmem>>, %arg9: memref<1x128xf32, #tpu.memory_space<vmem>>, %arg10: memref<128x128xf32, #tpu.memory_space<vmem>>, %arg11: memref<32x128xf32, #tpu.memory_space<vmem>>, %arg12: memref<32x128xf32, #tpu.memory_space<vmem>>) attributes {dimension_semantics = [#tpu.dimension_semantics<arbitrary>], iteration_bounds = array<i64: 1>, scalar_prefetch = 0 : i64, scratch_operands = 1 : i64, tpu.core_type = #tpu.core_type<tc>, window_params = [{pipeline_mode = #tpu.pipeline_mode<synchronous>, transform_indices = @transform_0, window_bounds = array<i64: 48, 128>}, {pipeline_mode = #tpu.pipeline_mode<synchronous>, transform_indices = @transform_1, window_bounds = array<i64: 48, 144>}, {pipeline_mode = #tpu.pipeline_mode<synchronous>, transform_indices = @transform_2, window_bounds = array<i64: 128, 144>}, {pipeline_mode = #tpu.pipeline_mode<synchronous>, transform_indices = @transform_3, window_bounds = array<i64: 48, 144>}, {pipeline_mode = #tpu.pipeline_mode<synchronous>, transform_indices = @transform_4, window_bounds = array<i64: 9, 128>}, {pipeline_mode = #tpu.pipeline_mode<synchronous>, transform_indices = @transform_5, window_bounds = array<i64: 128, 128>}, {pipeline_mode = #tpu.pipeline_mode<synchronous>, transform_indices = @transform_6, window_bounds = array<i64: 1, 128>}, {pipeline_mode = #tpu.pipeline_mode<synchronous>, transform_indices = @transform_7, window_bounds = array<i64: 1, 128>}, {pipeline_mode = #tpu.pipeline_mode<synchronous>, transform_indices = @transform_8, window_bounds = array<i64: 1, 128>}, {pipeline_mode = #tpu.pipeline_mode<synchronous>, transform_indices = @transform_9, window_bounds = array<i64: 128, 128>}, {pipeline_mode = #tpu.pipeline_mode<synchronous>, transform_indices = @transform_10, window_bounds = array<i64: 32, 128>}]} {
    %c0 = arith.constant 0 : index
    %c0_0 = arith.constant 0 : index
    %0 = vector.load %arg1[%c0, %c0_0] : memref<48x128xf32, #tpu.memory_space<vmem>>, vector<48x128xf32>
    %c0_1 = arith.constant 0 : index
    %c0_2 = arith.constant 0 : index
    %1 = vector.load %arg3[%c0_1, %c0_2] : memref<128x144xf32, #tpu.memory_space<vmem>>, vector<128x144xf32>
    %cst = arith.constant dense<0.000000e+00> : vector<48x144xf32>
    %2 = tpu.matmul %0, %1, %cst {dimension_numbers = #tpu.dot_dimension_numbers<[1], [0], [0], [1], [0, 0, 1, 1], [], []>, precision = #tpu.contract_precision<fp32>} : vector<48x128xf32>, vector<128x144xf32>, vector<48x144xf32> -> vector<48x144xf32>
    %c0_3 = arith.constant 0 : index
    %c0_4 = arith.constant 0 : index
    %3 = vector.load %arg2[%c0_3, %c0_4] : memref<48x144xf32, #tpu.memory_space<vmem>>, vector<48x144xf32>
    %c0_5 = arith.constant 0 : index
    %c0_6 = arith.constant 0 : index
    %4 = vector.load %arg4[%c0_5, %c0_6] : memref<48x144xf32, #tpu.memory_space<vmem>>, vector<48x144xf32>
    %5 = arith.addf %3, %4 : vector<48x144xf32>
    %6 = arith.addf %5, %2 : vector<48x144xf32>
    %c0_7 = arith.constant 0 : index
    %c0_8 = arith.constant 0 : index
    %7 = vector.load %arg5[%c0_7, %c0_8] : memref<9x128xf32, #tpu.memory_space<vmem>>, vector<1x128xf32>
    %8 = vector.shape_cast %7 : vector<1x128xf32> to vector<1x128xf32>
    %9 = vector.broadcast %8 : vector<1x128xf32> to vector<16x128xf32>
    %c1 = arith.constant 1 : index
    %c0_9 = arith.constant 0 : index
    %10 = vector.load %arg5[%c1, %c0_9] : memref<9x128xf32, #tpu.memory_space<vmem>>, vector<1x128xf32>
    %11 = vector.shape_cast %10 : vector<1x128xf32> to vector<1x128xf32>
    %12 = vector.broadcast %11 : vector<1x128xf32> to vector<16x128xf32>
    %c2 = arith.constant 2 : index
    %c0_10 = arith.constant 0 : index
    %13 = vector.load %arg5[%c2, %c0_10] : memref<9x128xf32, #tpu.memory_space<vmem>>, vector<1x128xf32>
    %14 = vector.shape_cast %13 : vector<1x128xf32> to vector<1x128xf32>
    %15 = vector.broadcast %14 : vector<1x128xf32> to vector<16x128xf32>
    %c3 = arith.constant 3 : index
    %c0_11 = arith.constant 0 : index
    %16 = vector.load %arg5[%c3, %c0_11] : memref<9x128xf32, #tpu.memory_space<vmem>>, vector<1x128xf32>
    %17 = vector.shape_cast %16 : vector<1x128xf32> to vector<1x128xf32>
    %18 = vector.broadcast %17 : vector<1x128xf32> to vector<16x128xf32>
    %c4 = arith.constant 4 : index
    %c0_12 = arith.constant 0 : index
    %19 = vector.load %arg5[%c4, %c0_12] : memref<9x128xf32, #tpu.memory_space<vmem>>, vector<1x128xf32>
    %20 = vector.shape_cast %19 : vector<1x128xf32> to vector<1x128xf32>
    %21 = vector.broadcast %20 : vector<1x128xf32> to vector<16x128xf32>
    %c5 = arith.constant 5 : index
    %c0_13 = arith.constant 0 : index
    %22 = vector.load %arg5[%c5, %c0_13] : memref<9x128xf32, #tpu.memory_space<vmem>>, vector<1x128xf32>
    %23 = vector.shape_cast %22 : vector<1x128xf32> to vector<1x128xf32>
    %24 = vector.broadcast %23 : vector<1x128xf32> to vector<16x128xf32>
    %c6 = arith.constant 6 : index
    %c0_14 = arith.constant 0 : index
    %25 = vector.load %arg5[%c6, %c0_14] : memref<9x128xf32, #tpu.memory_space<vmem>>, vector<1x128xf32>
    %26 = vector.shape_cast %25 : vector<1x128xf32> to vector<1x128xf32>
    %27 = vector.broadcast %26 : vector<1x128xf32> to vector<16x128xf32>
    %c7 = arith.constant 7 : index
    %c0_15 = arith.constant 0 : index
    %28 = vector.load %arg5[%c7, %c0_15] : memref<9x128xf32, #tpu.memory_space<vmem>>, vector<1x128xf32>
    %29 = vector.shape_cast %28 : vector<1x128xf32> to vector<1x128xf32>
    %30 = vector.broadcast %29 : vector<1x128xf32> to vector<16x128xf32>
    %c8 = arith.constant 8 : index
    %c0_16 = arith.constant 0 : index
    %31 = vector.load %arg5[%c8, %c0_16] : memref<9x128xf32, #tpu.memory_space<vmem>>, vector<1x128xf32>
    %32 = vector.shape_cast %31 : vector<1x128xf32> to vector<1x128xf32>
    %33 = vector.broadcast %32 : vector<1x128xf32> to vector<16x128xf32>
    %34 = vector.extract_strided_slice %6 {offsets = [0, 0], sizes = [18, 144], strides = [1, 1]} : vector<48x144xf32> to vector<18x144xf32>
    %35 = vector.extract_strided_slice %34 {offsets = [0, 0], sizes = [18, 128], strides = [1, 1]} : vector<18x144xf32> to vector<18x128xf32>
    %36 = vector.extract_strided_slice %35 {offsets = [0, 0], sizes = [16, 128], strides = [1, 1]} : vector<18x128xf32> to vector<16x128xf32>
    %37 = arith.mulf %36, %9 : vector<16x128xf32>
    %38 = vector.extract_strided_slice %35 {offsets = [1, 0], sizes = [16, 128], strides = [1, 1]} : vector<18x128xf32> to vector<16x128xf32>
    %39 = arith.mulf %38, %18 : vector<16x128xf32>
    %40 = arith.addf %37, %39 : vector<16x128xf32>
    %41 = vector.extract_strided_slice %35 {offsets = [2, 0], sizes = [16, 128], strides = [1, 1]} : vector<18x128xf32> to vector<16x128xf32>
    %42 = arith.mulf %41, %27 : vector<16x128xf32>
    %43 = arith.addf %40, %42 : vector<16x128xf32>
    %44 = vector.extract_strided_slice %34 {offsets = [0, 8], sizes = [18, 128], strides = [1, 1]} : vector<18x144xf32> to vector<18x128xf32>
    %45 = vector.extract_strided_slice %44 {offsets = [0, 0], sizes = [16, 128], strides = [1, 1]} : vector<18x128xf32> to vector<16x128xf32>
    %46 = arith.mulf %45, %12 : vector<16x128xf32>
    %47 = arith.addf %43, %46 : vector<16x128xf32>
    %48 = vector.extract_strided_slice %44 {offsets = [1, 0], sizes = [16, 128], strides = [1, 1]} : vector<18x128xf32> to vector<16x128xf32>
    %49 = arith.mulf %48, %21 : vector<16x128xf32>
    %50 = arith.addf %47, %49 : vector<16x128xf32>
    %51 = vector.extract_strided_slice %44 {offsets = [2, 0], sizes = [16, 128], strides = [1, 1]} : vector<18x128xf32> to vector<16x128xf32>
    %52 = arith.mulf %51, %30 : vector<16x128xf32>
    %53 = arith.addf %50, %52 : vector<16x128xf32>
    %54 = vector.extract_strided_slice %34 {offsets = [0, 16], sizes = [18, 128], strides = [1, 1]} : vector<18x144xf32> to vector<18x128xf32>
    %55 = vector.extract_strided_slice %54 {offsets = [0, 0], sizes = [16, 128], strides = [1, 1]} : vector<18x128xf32> to vector<16x128xf32>
    %56 = arith.mulf %55, %15 : vector<16x128xf32>
    %57 = arith.addf %53, %56 : vector<16x128xf32>
    %58 = vector.extract_strided_slice %54 {offsets = [1, 0], sizes = [16, 128], strides = [1, 1]} : vector<18x128xf32> to vector<16x128xf32>
    %59 = arith.mulf %58, %24 : vector<16x128xf32>
    %60 = arith.addf %57, %59 : vector<16x128xf32>
    %61 = vector.extract_strided_slice %54 {offsets = [2, 0], sizes = [16, 128], strides = [1, 1]} : vector<18x128xf32> to vector<16x128xf32>
    %62 = arith.mulf %61, %33 : vector<16x128xf32>
    %63 = arith.addf %60, %62 : vector<16x128xf32>
    %c0_17 = arith.constant 0 : index
    %c0_18 = arith.constant 0 : index
    %64 = vector.load %arg12[%c0_17, %c0_18] : memref<32x128xf32, #tpu.memory_space<vmem>>, vector<16x128xf32>
    tpu.vector_store %arg12[%c0_17, %c0_18], %63 {strides = array<i32>} : memref<32x128xf32, #tpu.memory_space<vmem>>, vector<16x128xf32>,
    %65 = vector.extract_strided_slice %6 {offsets = [24, 0], sizes = [18, 144], strides = [1, 1]} : vector<48x144xf32> to vector<18x144xf32>
    %66 = vector.extract_strided_slice %65 {offsets = [0, 0], sizes = [18, 128], strides = [1, 1]} : vector<18x144xf32> to vector<18x128xf32>
    %67 = vector.extract_strided_slice %66 {offsets = [0, 0], sizes = [16, 128], strides = [1, 1]} : vector<18x128xf32> to vector<16x128xf32>
    %68 = arith.mulf %67, %9 : vector<16x128xf32>
    %69 = vector.extract_strided_slice %66 {offsets = [1, 0], sizes = [16, 128], strides = [1, 1]} : vector<18x128xf32> to vector<16x128xf32>
    %70 = arith.mulf %69, %18 : vector<16x128xf32>
    %71 = arith.addf %68, %70 : vector<16x128xf32>
    %72 = vector.extract_strided_slice %66 {offsets = [2, 0], sizes = [16, 128], strides = [1, 1]} : vector<18x128xf32> to vector<16x128xf32>
    %73 = arith.mulf %72, %27 : vector<16x128xf32>
    %74 = arith.addf %71, %73 : vector<16x128xf32>
    %75 = vector.extract_strided_slice %65 {offsets = [0, 8], sizes = [18, 128], strides = [1, 1]} : vector<18x144xf32> to vector<18x128xf32>
    %76 = vector.extract_strided_slice %75 {offsets = [0, 0], sizes = [16, 128], strides = [1, 1]} : vector<18x128xf32> to vector<16x128xf32>
    %77 = arith.mulf %76, %12 : vector<16x128xf32>
    %78 = arith.addf %74, %77 : vector<16x128xf32>
    %79 = vector.extract_strided_slice %75 {offsets = [1, 0], sizes = [16, 128], strides = [1, 1]} : vector<18x128xf32> to vector<16x128xf32>
    %80 = arith.mulf %79, %21 : vector<16x128xf32>
    %81 = arith.addf %78, %80 : vector<16x128xf32>
    %82 = vector.extract_strided_slice %75 {offsets = [2, 0], sizes = [16, 128], strides = [1, 1]} : vector<18x128xf32> to vector<16x128xf32>
    %83 = arith.mulf %82, %30 : vector<16x128xf32>
    %84 = arith.addf %81, %83 : vector<16x128xf32>
    %85 = vector.extract_strided_slice %65 {offsets = [0, 16], sizes = [18, 128], strides = [1, 1]} : vector<18x144xf32> to vector<18x128xf32>
    %86 = vector.extract_strided_slice %85 {offsets = [0, 0], sizes = [16, 128], strides = [1, 1]} : vector<18x128xf32> to vector<16x128xf32>
    %87 = arith.mulf %86, %15 : vector<16x128xf32>
    %88 = arith.addf %84, %87 : vector<16x128xf32>
    %89 = vector.extract_strided_slice %85 {offsets = [1, 0], sizes = [16, 128], strides = [1, 1]} : vector<18x128xf32> to vector<16x128xf32>
    %90 = arith.mulf %89, %24 : vector<16x128xf32>
    %91 = arith.addf %88, %90 : vector<16x128xf32>
    %92 = vector.extract_strided_slice %85 {offsets = [2, 0], sizes = [16, 128], strides = [1, 1]} : vector<18x128xf32> to vector<16x128xf32>
    %93 = arith.mulf %92, %33 : vector<16x128xf32>
    %94 = arith.addf %91, %93 : vector<16x128xf32>
    %c16 = arith.constant 16 : index
    %c0_19 = arith.constant 0 : index
    %95 = vector.load %arg12[%c16, %c0_19] : memref<32x128xf32, #tpu.memory_space<vmem>>, vector<16x128xf32>
    tpu.vector_store %arg12[%c16, %c0_19], %94 {strides = array<i32>} : memref<32x128xf32, #tpu.memory_space<vmem>>, vector<16x128xf32>,
    %c0_20 = arith.constant 0 : index
    %c0_21 = arith.constant 0 : index
    %96 = vector.load %arg12[%c0_20, %c0_21] : memref<32x128xf32, #tpu.memory_space<vmem>>, vector<32x128xf32>
    %c0_22 = arith.constant 0 : index
    %c0_23 = arith.constant 0 : index
    %97 = vector.load %arg6[%c0_22, %c0_23] : memref<128x128xf32, #tpu.memory_space<vmem>>, vector<128x128xf32>
    %cst_24 = arith.constant dense<0.000000e+00> : vector<32x128xf32>
    %98 = tpu.matmul %96, %97, %cst_24 {dimension_numbers = #tpu.dot_dimension_numbers<[1], [0], [0], [1], [0, 0, 1, 1], [], []>, precision = #tpu.contract_precision<fp32>} : vector<32x128xf32>, vector<128x128xf32>, vector<32x128xf32> -> vector<32x128xf32>
    %c0_25 = arith.constant 0 : index
    %c0_26 = arith.constant 0 : index
    %99 = vector.load %arg7[%c0_25, %c0_26] : memref<1x128xf32, #tpu.memory_space<vmem>>, vector<1x128xf32>
    %100 = vector.broadcast %99 : vector<1x128xf32> to vector<32x128xf32>
    %101 = arith.addf %98, %100 : vector<32x128xf32>
    %c0_27 = arith.constant 0 : index
    %c0_28 = arith.constant 0 : index
    %102 = vector.load %arg10[%c0_27, %c0_28] : memref<128x128xf32, #tpu.memory_space<vmem>>, vector<128x128xf32>
    %cst_29 = arith.constant dense<0.000000e+00> : vector<128xf32>
    %103 = vector.multi_reduction <add>, %101, %cst_29 [0] : vector<32x128xf32> to vector<128xf32>
    %104 = vector.shape_cast %103 : vector<128xf32> to vector<1x128xf32>
    %cst_30 = arith.constant dense<0.000000e+00> : vector<1x128xf32>
    %105 = tpu.matmul %104, %102, %cst_30 {dimension_numbers = #tpu.dot_dimension_numbers<[1], [0], [0], [1], [0, 0, 1, 1], [], []>, precision = #tpu.contract_precision<fp32>} : vector<1x128xf32>, vector<128x128xf32>, vector<1x128xf32> -> vector<1x128xf32>
    %cst_31 = arith.constant 0.001953125 : f32
    %106 = vector.broadcast %cst_31 : f32 to vector<1x128xf32>
    %107 = arith.mulf %105, %106 : vector<1x128xf32>
    %108 = vector.broadcast %107 : vector<1x128xf32> to vector<32x128xf32>
    %109 = arith.subf %101, %108 : vector<32x128xf32>
    %110 = arith.mulf %109, %109 : vector<32x128xf32>
    %cst_32 = arith.constant dense<0.000000e+00> : vector<128xf32>
    %111 = vector.multi_reduction <add>, %110, %cst_32 [0] : vector<32x128xf32> to vector<128xf32>
    %112 = vector.shape_cast %111 : vector<128xf32> to vector<1x128xf32>
    %cst_33 = arith.constant dense<0.000000e+00> : vector<1x128xf32>
    %113 = tpu.matmul %112, %102, %cst_33 {dimension_numbers = #tpu.dot_dimension_numbers<[1], [0], [0], [1], [0, 0, 1, 1], [], []>, precision = #tpu.contract_precision<fp32>} : vector<1x128xf32>, vector<128x128xf32>, vector<1x128xf32> -> vector<1x128xf32>
    %cst_34 = arith.constant 0.001953125 : f32
    %114 = vector.broadcast %cst_34 : f32 to vector<1x128xf32>
    %115 = arith.mulf %113, %114 : vector<1x128xf32>
    %c0_35 = arith.constant 0 : index
    %c0_36 = arith.constant 0 : index
    %116 = vector.load %arg8[%c0_35, %c0_36] : memref<1x128xf32, #tpu.memory_space<vmem>>, vector<1x128xf32>
    %cst_37 = arith.constant 9.99999974E-6 : f32
    %117 = vector.broadcast %cst_37 : f32 to vector<1x128xf32>
    %118 = arith.addf %115, %117 : vector<1x128xf32>
    %119 = math.rsqrt %118 : vector<1x128xf32>
    %120 = arith.mulf %116, %119 : vector<1x128xf32>
    %121 = vector.broadcast %120 : vector<1x128xf32> to vector<32x128xf32>
    %122 = arith.mulf %109, %121 : vector<32x128xf32>
    %c0_38 = arith.constant 0 : index
    %c0_39 = arith.constant 0 : index
    %123 = vector.load %arg9[%c0_38, %c0_39] : memref<1x128xf32, #tpu.memory_space<vmem>>, vector<1x128xf32>
    %124 = vector.broadcast %123 : vector<1x128xf32> to vector<32x128xf32>
    %125 = arith.addf %122, %124 : vector<32x128xf32>
    %cst_40 = arith.constant 0.000000e+00 : f32
    %126 = vector.broadcast %cst_40 : f32 to vector<32x128xf32>
    %127 = arith.maximumf %125, %126 : vector<32x128xf32>
    %c0_41 = arith.constant 0 : index
    %c0_42 = arith.constant 0 : index
    %128 = vector.load %arg11[%c0_41, %c0_42] : memref<32x128xf32, #tpu.memory_space<vmem>>, vector<32x128xf32>
    tpu.vector_store %arg11[%c0_41, %c0_42], %127 {strides = array<i32>} : memref<32x128xf32, #tpu.memory_space<vmem>>, vector<32x128xf32>,
    return
  }
  func.func @transform_0(%arg0: i32) -> (i32, i32) {
    %c0_i32 = arith.constant 0 : i32
    %c0_i32_0 = arith.constant 0 : i32
    %c0_i32_1 = arith.constant 0 : i32
    return %c0_i32, %c0_i32_0 : i32, i32
  }
  func.func @transform_1(%arg0: i32) -> (i32, i32) {
    %c0_i32 = arith.constant 0 : i32
    %c0_i32_0 = arith.constant 0 : i32
    %c0_i32_1 = arith.constant 0 : i32
    return %c0_i32, %c0_i32_0 : i32, i32
  }
  func.func @transform_2(%arg0: i32) -> (i32, i32) {
    %c0_i32 = arith.constant 0 : i32
    %c0_i32_0 = arith.constant 0 : i32
    %c0_i32_1 = arith.constant 0 : i32
    return %c0_i32, %c0_i32_0 : i32, i32
  }
  func.func @transform_3(%arg0: i32) -> (i32, i32) {
    %c0_i32 = arith.constant 0 : i32
    %c0_i32_0 = arith.constant 0 : i32
    %c0_i32_1 = arith.constant 0 : i32
    return %c0_i32, %c0_i32_0 : i32, i32
  }
  func.func @transform_4(%arg0: i32) -> (i32, i32) {
    %c0_i32 = arith.constant 0 : i32
    %c0_i32_0 = arith.constant 0 : i32
    %c0_i32_1 = arith.constant 0 : i32
    return %c0_i32, %c0_i32_0 : i32, i32
  }
  func.func @transform_5(%arg0: i32) -> (i32, i32) {
    %c0_i32 = arith.constant 0 : i32
    %c0_i32_0 = arith.constant 0 : i32
    %c0_i32_1 = arith.constant 0 : i32
    return %c0_i32, %c0_i32_0 : i32, i32
  }
  func.func @transform_6(%arg0: i32) -> (i32, i32) {
    %c0_i32 = arith.constant 0 : i32
    %c0_i32_0 = arith.constant 0 : i32
    %c0_i32_1 = arith.constant 0 : i32
    return %c0_i32, %c0_i32_0 : i32, i32
  }
  func.func @transform_7(%arg0: i32) -> (i32, i32) {
    %c0_i32 = arith.constant 0 : i32
    %c0_i32_0 = arith.constant 0 : i32
    %c0_i32_1 = arith.constant 0 : i32
    return %c0_i32, %c0_i32_0 : i32, i32
  }
  func.func @transform_8(%arg0: i32) -> (i32, i32) {
    %c0_i32 = arith.constant 0 : i32
    %c0_i32_0 = arith.constant 0 : i32
    %c0_i32_1 = arith.constant 0 : i32
    return %c0_i32, %c0_i32_0 : i32, i32
  }
  func.func @transform_9(%arg0: i32) -> (i32, i32) {
    %c0_i32 = arith.constant 0 : i32
    %c0_i32_0 = arith.constant 0 : i32
    %c0_i32_1 = arith.constant 0 : i32
    return %c0_i32, %c0_i32_0 : i32, i32
  }
  func.func @transform_10(%arg0: i32) -> (i32, i32) {
    %c0_i32 = arith.constant 0 : i32
    %c0_i32_0 = arith.constant 0 : i32
    %c0_i32_1 = arith.constant 0 : i32
    return %c0_i32, %c0_i32_0 : i32, i32
  }
}

</mosaic_0001>

<bundles_post_ra>
// kernel: forward.1
= control target key start
LH: loop header
LB: loop body
LE: loop exit
PB: predicated region body
PF: predicated region fallthrough
CT: control target
= control target key end

     0   :  { %s2845_s11 = smov 8   ;;  %s2846_s16 = smov 16   ;;  %vm1155_vm0 = vcmask 1045504   ;;  %vm1139_vm1 = vcmask 1046528   ;;  %vm1185_vm2 = vcmask 982016   ;;  %vm1292_vm3 = vcmask 916480   ;;  %s5014_s2 = inlined_call_operand.vmem [shape: f32[128,144], index: 2, kind: input, shape index: {}]   ;;  %s5015_s4 = inlined_call_operand.vmem [shape: f32[9,128], index: 4, kind: input, shape index: {}]   ;;  %s5016_s0 = inlined_call_operand.vmem [shape: f32[48,128], index: 0, kind: input, shape index: {}]   ;;  %s5017_s1 = inlined_call_operand.vmem [shape: f32[48,144], index: 1, kind: input, shape index: {}]   ;;  %s5018_s3 = inlined_call_operand.vmem [shape: f32[48,144], index: 3, kind: input, shape index: {}]   ;;  %s5019_s5 = inlined_call_operand.vmem [shape: f32[128,128], index: 5, kind: input, shape index: {}]   ;;  %s5020_s6 = inlined_call_operand.vmem [shape: f32[1,128], index: 6, kind: input, shape index: {}]   ;;  %s5021_s9 = inlined_call_operand.vmem [shape: f32[128,128], index: 9, kind: input, shape index: {}]   ;;  %s5022_s8 = inlined_call_operand.vmem [shape: f32[1,128], index: 8, kind: input, shape index: {}]   ;;  %s5023_s7 = inlined_call_operand.vmem [shape: f32[1,128], index: 7, kind: input, shape index: {}]   ;;  %s5024_s10 = inlined_call_operand.vmem [shape: f32[32,128], index: 10, kind: output, shape index: {}]  }
   0x1   :  { %v71_v0 = vld [vmem:[%s5014_s2 + $0xf0] sm:$0xff]  ;;  %v69_v1 = vld [vmem:[%s5014_s2 + $0xe0] sm:$0xff]  ;;  %s2848_s18 = smov 112  }
   0x2   :  { %v67_v2 = vld [vmem:[%s5014_s2 + $0xd0] sm:$0xff]  ;;  %v2913_v3 = vand.u32 4294901760, %v71_v0  ;;  %v2915_v4 = vand.u32 4294901760, %v69_v1  ;;  %v65_v6 = vld [vmem:[%s5014_s2 + $0xc0] sm:$0xff] }
   0x3   :  { %v2917_v5 = vand.u32 4294901760, %v67_v2  ;;  %v63_v7 = vld [vmem:[%s5014_s2 + $0xb0] sm:$0xff]  ;;  %v61_v8 = vld [vmem:[%s5014_s2 + $0xa0] sm:$0xff]  ;;  %v2928_v9 = vand.u32 4294901760, %v65_v6 }
   0x4   :  { %v2930_v10 = vand.u32 4294901760, %v63_v7  ;;  %v2932_v11 = vand.u32 4294901760, %v61_v8  ;;  %v59_v12 = vld [vmem:[%s5014_s2 + $0x90] sm:$0xff]  ;;  %v57_v13 = vld [vmem:[%s5014_s2 + $0x80] sm:$0xff]  ;;  %74 = vmatpush.msra.mxu0 %v2913_v3  ;;  %v2942_v14 = vsub.f32 %v71_v0, %v2913_v3  ;;  %v2945_v15 = vsub.f32 %v69_v1, %v2915_v4  ;;  %355 = vmatpush.msra.mxu3 %v2913_v3 }
   0x5   :  { %v2949_v16 = vsub.f32 %v67_v2, %v2917_v5  ;;  %v2951_v17 = vand.u32 4294901760, %v59_v12  ;;  %v55_v18 = vld [vmem:[%s5014_s2 + $0x70] sm:$0xff]  ;;  %v2957_v19 = vsub.f32 %v65_v6, %v2928_v9  ;;  %v2970_v25 = vand.u32 4294901760, %v57_v13  ;;  %v53_v26 = vld [vmem:[%s5014_s2 + $0x60] sm:$0xff] }
   0x6   :  { %v2960_v20 = vsub.f32 %v63_v7, %v2930_v10  ;;  %v2963_v21 = vsub.f32 %v61_v8, %v2932_v11  ;;  %76 = vmatpush.msra.mxu0 %v2915_v4  ;;  %277 = vmatpush.msra.mxu2 %v2942_v14  ;;  %v5042_v22 = vand.u32 4294901760, %v2942_v14  ;;  %v5041_v23 = vand.u32 4294901760, %v2945_v15  ;;  %v51_v34 = vld [vmem:[%s5014_s2 + $0x50] sm:$0xff]  ;;  %v49_v41 = vld [vmem:[%s5014_s2 + $0x40] sm:$0xff] }
   0x7   :  { %v5036_v24 = vand.u32 4294901760, %v2949_v16  ;;  %357 = vmatpush.msra.mxu3 %v2915_v4  ;;  %v5035_v27 = vand.u32 4294901760, %v2957_v19  ;;  %v2977_v28 = vand.u32 4294901760, %v55_v18  ;;  %v2980_v29 = vsub.f32 %v59_v12, %v2951_v17  ;;  %v47_v49 = vld [vmem:[%s5014_s2 + $0x30] sm:$0xff]  ;;  %v45_v55 = vld [vmem:[%s5014_s2 + $0x20] sm:$0xff] }
   0x8   :  { %78 = vmatpush.msra.mxu0 %v2917_v5  ;;  %280 = vmatpush.msra.mxu2 %v2945_v15  ;;  %v157_v30 = vsub.f32 %v2942_v14, %v5042_v22  ;;  %v163_v31 = vsub.f32 %v2945_v15, %v5041_v23  ;;  %v5033_v33 = vand.u32 4294901760, %v2960_v20  ;;  %v2998_v35 = vand.u32 4294901760, %v53_v26  ;;  %v35_v56 = vld [vmem:[%s5016_s0] sm:$0xff]  ;;  %v43_v62 = vld [vmem:[%s5014_s2 + $0x10] sm:$0xff]  ;;  %v38_v23 = vld [vmem:[%s5016_s0 + $0x18] sm:$0xff] }
   0x9   :  { %v169_v32 = vsub.f32 %v2949_v16, %v5036_v24  ;;  %359 = vmatpush.msra.mxu3 %v2917_v5  ;;  %v5032_v36 = vand.u32 4294901760, %v2963_v21  ;;  %v175_v39 = vsub.f32 %v2957_v19, %v5035_v27  ;;  %v3007_v40 = vsub.f32 %v57_v13, %v2970_v25  ;;  %v41_v8 = vld [vmem:[%s5014_s2] sm:$0xff]  ;;  %v64_v24 = vld [vmem:[%s5014_s2 + $0xb8] sm:$0xff] }
   0xa   :  { %80 = vmatpush.msra.mxu0 %v2928_v9  ;;  %v158_v37 = vand.u32 4294901760, %v157_v30  ;;  %283 = vmatpush.msra.mxu2 %v2949_v16  ;;  %v164_v38 = vand.u32 4294901760, %v163_v31  ;;  %v5030_v42 = vand.u32 4294901760, %v2980_v29  ;;  %v3015_v43 = vsub.f32 %v55_v18, %v2977_v28  ;;  %v36_v30 = vld [vmem:[%s5016_s0 + $0x8] sm:$0xff]  ;;  %v72_v31 = vld [vmem:[%s5014_s2 + $0xf8] sm:$0xff] }
   0xb   :  { %361 = vmatpush.msra.mxu3 %v2928_v9  ;;  %v170_v44 = vand.u32 4294901760, %v169_v32  ;;  %v181_v45 = vsub.f32 %v2960_v20, %v5033_v33  ;;  %v3021_v46 = vand.u32 4294901760, %v51_v34  ;;  %v187_v47 = vsub.f32 %v2963_v21, %v5032_v36 }
   0xc   :  { %82 = vmatpush.msra.mxu0 %v2930_v10  ;;  %159 = vmatpush.msra.mxu1 %v158_v37  ;;  %v3028_v48 = vand.u32 4294901760, %v49_v41  ;;  %v176_v50 = vand.u32 4294901760, %v175_v39  ;;  %v5029_v51 = vand.u32 4294901760, %v3007_v40  ;;  %v3036_v52 = vsub.f32 %v53_v26, %v2998_v35 }
   0xd   :  { %286 = vmatpush.msra.mxu2 %v2957_v19  ;;  %363 = vmatpush.msra.mxu3 %v2930_v10  ;;  %v193_v53 = vsub.f32 %v2980_v29, %v5030_v42  ;;  %v5028_v54 = vand.u32 4294901760, %v3015_v43  ;;  %v182_v57 = vand.u32 4294901760, %v181_v45  ;;  %v3051_v58 = vand.u32 4294901760, %v47_v49 }
   0xe   :  { %84 = vmatpush.msra.mxu0 %v2932_v11  ;;  %165 = vmatpush.msra.mxu1 %v164_v38  ;;  %v3054_v59 = vsub.f32 %v51_v34, %v3021_v46  ;;  %v188_v60 = vand.u32 4294901760, %v187_v47  ;;  %v3059_v61 = vsub.f32 %v49_v41, %v3028_v48  ;;  %v199_v63 = vsub.f32 %v3007_v40, %v5029_v51  ;;  %v70_v34 = vld [vmem:[%s5014_s2 + $0xe8] sm:$0xff] }
   0xf   :  { %289 = vmatpush.msra.mxu2 %v2960_v20  ;;  %365 = vmatpush.msra.mxu3 %v2932_v11  ;;  %v3068_v0 = vand.u32 4294901760, %v45_v55  ;;  %v5026_v1 = vand.u32 4294901760, %v3036_v52  ;;  %v3071_v2 = vand.u32 4294901760, %v35_v56  ;;  %v194_v6 = vand.u32 4294901760, %v193_v53 }
  0x10   :  { %86 = vmatpush.msra.mxu0 %v2951_v17  ;;  %171 = vmatpush.msra.mxu1 %v170_v44  ;;  %v205_v7 = vsub.f32 %v3015_v43, %v5028_v54  ;;  %v3082_v12 = vand.u32 4294901760, %v43_v62  ;;  %v5025_v13 = vand.u32 4294901760, %v3054_v59  ;;  %v3086_v18 = vsub.f32 %v47_v49, %v3051_v58 }
  0x11   :  { %292 = vmatpush.msra.mxu2 %v2963_v21  ;;  %367 = vmatpush.msra.mxu3 %v2951_v17  ;;  %v3089_v26 = vsub.f32 %v35_v56, %v3071_v2  ;;  %v5027_v32 = vand.u32 4294901760, %v3059_v61  ;;  %v200_v37 = vand.u32 4294901760, %v199_v63  ;;  %v211_v38 = vsub.f32 %v3036_v52, %v5026_v1  ;;  %v66_v1 = vld [vmem:[%s5014_s2 + $0xc8] sm:$0xff] }
  0x12   :  { %88 = vmatpush.msra.mxu0 %v2970_v25  ;;  %177 = vmatpush.msra.mxu1 %v176_v50  ;;  %v3107_v39 = vand.u32 4294901760, %v41_v8  ;;  %v3110_v41 = vsub.f32 %v45_v55, %v3068_v0  ;;  %v206_v44 = vand.u32 4294901760, %v205_v7  ;;  %v3117_v47 = vand.u32 4294901760, %v36_v30 }
  0x13   :  { %295 = vmatpush.msra.mxu2 %v2980_v29  ;;  %369 = vmatpush.msra.mxu3 %v2970_v25  ;;  %5088 = vst [vmem:[#allocation3_spill] sm:$0xff] %v3089_v26  ;;  %v3115_v45 = vand.u32 4294901760, %v3089_v26  ;;  %v3119_v49 = vand.u32 4294901760, %v72_v31  ;;  %v217_v50 = vsub.f32 %v3054_v59, %v5025_v13  ;;  %v5031_v53 = vand.u32 4294901760, %v3086_v18 }
  0x14   :  { %90 = vmatpush.msra.mxu0 %v2977_v28  ;;  %183 = vmatpush.msra.mxu1 %v182_v57  ;;  %v3127_v55 = vsub.f32 %v43_v62, %v3082_v12  ;;  %v3129_v56 = vand.u32 4294901760, %v70_v34  ;;  %v68_v57 = vld [vmem:[%s5014_s2 + $0xd8] sm:$0xff]  ;;  %v212_v62 = vand.u32 4294901760, %v211_v38  ;;  %v3145_v7 = vsub.f32 %v41_v8, %v3107_v39  ;;  %v37_v8 = vld [vmem:[%s5016_s0 + $0x10] sm:$0xff] }
  0x15   :  { %298 = vmatpush.msra.mxu2 %v3007_v40  ;;  %371 = vmatpush.msra.mxu3 %v2977_v28  ;;  %5089 = vst [vmem:[#allocation4_spill] sm:$0xff] %v3115_v45  ;;  %v3140_v63 = vsub.f32 %v72_v31, %v3119_v49  ;;  %v108_v31 = vsub.f32 %v3089_v26, %v3115_v45  ;;  %v218_v38 = vand.u32 4294901760, %v217_v50  ;;  %v3173_v42 = vand.u32 4294901760, %v66_v1 }
  0x16   :  { %92 = vmatpush.msra.mxu0 %v2998_v35  ;;  %189 = vmatpush.msra.mxu1 %v188_v60  ;;  %v223_v60 = vsub.f32 %v3059_v61, %v5027_v32  ;;  %v3148_v13 = vsub.f32 %v70_v34, %v3129_v56  ;;  %v3163_v34 = vand.u32 4294901760, %v68_v57  ;;  %v229_v32 = vsub.f32 %v3086_v18, %v5031_v53 }
  0x17   :  { %301 = vmatpush.msra.mxu2 %v3015_v43  ;;  %373 = vmatpush.msra.mxu3 %v2998_v35  ;;  %v5038_v54 = vand.u32 4294901760, %v3127_v55  ;;  %v5037_v51 = vand.u32 4294901760, %v3140_v63  ;;  %v5039_v50 = vand.u32 4294901760, %v3145_v7  ;;  %v3180_v53 = vand.u32 4294901760, %v37_v8 }
  0x18   :  { %94 = vmatpush.msra.mxu0 %v3021_v46  ;;  %195 = vmatpush.msra.mxu1 %v194_v6  ;;  %v5034_v6 = vand.u32 4294901760, %v3110_v41  ;;  %5090 = vst [vmem:[#allocation5_spill] sm:$0xff] %v3148_v13  ;;  %v5040_v36 = vand.u32 4294901760, %v3148_v13 }
  0x19   :  { %304 = vmatpush.msra.mxu2 %v3036_v52  ;;  %375 = vmatpush.msra.mxu3 %v3021_v46  ;;  %v241_v27 = vsub.f32 %v3127_v55, %v5038_v54 }
  0x1a   :  { %96 = vmatpush.msra.mxu0 %v3028_v48  ;;  %201 = vmatpush.msra.mxu1 %v200_v37  ;;  %v3158_v37 = vsub.f32 %v36_v30, %v3117_v47  ;;  %v224_v30 = vand.u32 4294901760, %v223_v60  ;;  %v3184_v60 = vand.u32 4294901760, %v108_v31  ;;  %v653_v31 = vsub.f32 %v3140_v63, %v5037_v51 }
  0x1b   :  { %307 = vmatpush.msra.mxu2 %v3054_v59  ;;  %377 = vmatpush.msra.mxu3 %v3028_v48  ;;  %v3213_v51 = vsub.f32 %v37_v8, %v3180_v53  ;;  %v659_v54 = vsub.f32 %v3148_v13, %v5040_v36  ;;  %v242_v8 = vand.u32 4294901760, %v241_v27 }
  0x1c   :  { %5091 = vst [vmem:[#allocation6_spill] sm:$0xff] %v3158_v37  ;;  %98 = vmatpush.msra.mxu0 %v3051_v58  ;;  %207 = vmatpush.msra.mxu1 %v206_v44  ;;  %v235_v44 = vsub.f32 %v3110_v41, %v5034_v6  ;;  %v3188_v33 = vand.u32 4294901760, %v3158_v37  ;;  %v230_v6 = vand.u32 4294901760, %v229_v32  ;;  %v654_v36 = vand.u32 4294901760, %v653_v31 }
  0x1d   :  { %310 = vmatpush.msra.mxu2 %v3059_v61  ;;  %379 = vmatpush.msra.mxu3 %v3051_v58  ;;  %5092 = vst [vmem:[#allocation7_spill] sm:$0xff] %v3184_v60  ;;  %v3239_v27 = vand.u32 4294901760, %v3213_v51  ;;  %v660_v31 = vand.u32 4294901760, %v659_v54  ;;  %v5098_v54 = vand.u32 4294901760, %v2945_v15 }
  0x1e   :  { %100 = vmatpush.msra.mxu0 %v3068_v0  ;;  %213 = vmatpush.msra.mxu1 %v212_v62  ;;  %5093 = vst [vmem:[#allocation8_spill] sm:$0xff] %v3188_v33  ;;  %v3191_v62 = vsub.f32 %v68_v57, %v3163_v34  ;;  %v3206_v57 = vsub.f32 %v66_v1, %v3173_v42  ;;  %v236_v32 = vand.u32 4294901760, %v235_v44  ;;  %v62_v1 = vld [vmem:[%s5014_s2 + $0xa8] sm:$0xff]  ;;  %v5096_v44 = vand.u32 4294901760, %v2942_v14  ;;  %v60_v14 = vld [vmem:[%s5014_s2 + $0x98] sm:$0xff] }
  0x1f   :  { %313 = vmatpush.msra.mxu2 %v3086_v18  ;;  %381 = vmatpush.msra.mxu3 %v3068_v0  ;;  %5094 = vst [vmem:[#allocation9_spill] sm:$0xff] %v3213_v51 }
  0x20   :  { %102 = vmatpush.msra.mxu0 %v3082_v12  ;;  %219 = vmatpush.msra.mxu1 %v218_v38  ;;  %v247_v38 = vsub.f32 %v3145_v7, %v5039_v50  ;;  %v3226_v50 = vand.u32 4294901760, %v64_v24  ;;  %5095 = vst [vmem:[#allocation10_spill] sm:$0xff] %v3239_v27  ;;  %v5097_v22 = vand.u32 4294901760, %v3191_v62 }
  0x21   :  { %316 = vmatpush.msra.mxu2 %v3110_v41  ;;  %383 = vmatpush.msra.mxu3 %v3082_v12 }
  0x22   :  { %104 = vmatpush.msra.mxu0 %v3107_v39  ;;  %225 = vmatpush.msra.mxu1 %v224_v30  ;;  %v116_v30 = vsub.f32 %v3158_v37, %v3188_v33 }
  0x23   :  { %110 = vmatmul.f32.vlgmr.msra.gmra.mxu0 %v3184_v60  ;;  %319 = vmatpush.msra.mxu2 %v3127_v55  ;;  %v3235_v60 = vand.u32 4294901760, %v62_v1 }
  0x24   :  { %231 = vmatpush.msra.mxu1 %v230_v6  ;;  %385 = vmatpush.msra.mxu3 %v3107_v39  ;;  %v248_v6 = vand.u32 4294901760, %v247_v38  ;;  %v3243_v13 = vand.u32 4294901760, %v116_v30  ;;  %v5099_v38 = vand.u32 4294901760, %v3206_v57 }
  0x25   :  { %322 = vmatpush.msra.mxu2 %v3145_v7  ;;  %389 = vmatmul.f32.vlgmr.msra.gmra.mxu3 %v3115_v45  ;;  %v3246_v45 = vand.u32 4294901760, %v38_v23 }
  0x26   :  { %237 = vmatpush.msra.mxu1 %v236_v32  ;;  %325 = vmatmul.f32.vlgmr.msra.gmra.mxu2 %v3089_v26  ;;  %v665_v32 = vsub.f32 %v3191_v62, %v5097_v22  ;;  %v3252_v26 = vsub.f32 %v64_v24, %v3226_v50  ;;  %v671_v30 = vsub.f32 %v3206_v57, %v5099_v38  ;;  %v5104_v38 = vand.u32 4294901760, %v2957_v19 }
  0x27   :  { %426 = vmatpush.msrb.mxu0 %v5096_v44  ;;  %570 = vmatpush.msrb.mxu2 %v3119_v49  ;;  %v3264_v22 = vsub.f32 %v62_v1, %v3235_v60  ;;  %v124_v24 = vsub.f32 %v3213_v51, %v3239_v27  ;;  %v3274_v15 = vsub.f32 %v38_v23, %v3246_v45 }
  0x28   :  { %243 = vmatpush.msra.mxu1 %v242_v8  ;;  %655 = vmatpush.msrb.mxu3 %v654_v36  ;;  %v58_v36 = vld [vmem:[%s5014_s2 + $0x88] sm:$0xff]  ;;  %v666_v44 = vand.u32 4294901760, %v665_v32  ;;  %v5049_v1 = vand.u32 4294901760, %v3252_v26  ;;  %v3277_v8 = vand.u32 4294901760, %v60_v14  ;;  %v672_v23 = vand.u32 4294901760, %v671_v30 }
  0x29   :  { %430 = vmatpush.msrb.mxu0 %v5098_v54  ;;  %572 = vmatpush.msrb.mxu2 %v3129_v56  ;;  %5100 = vst [vmem:[#allocation11_spill] sm:$0xff] %v3274_v15  ;;  %v3288_v54 = vand.u32 4294901760, %v58_v36 }
  0x2a   :  { %249 = vmatpush.msra.mxu1 %v248_v6  ;;  %661 = vmatpush.msrb.mxu3 %v660_v31  ;;  %v5101_v6 = vand.u32 4294901760, %v2949_v16  ;;  %v39_v31 = vld [vmem:[%s5016_s0 + $0x20] sm:$0xff]  ;;  %v3295_v16 = vand.u32 4294901760, %v124_v24  ;;  %v677_v30 = vsub.f32 %v3252_v26, %v5049_v1  ;;  %v5106_v24 = vand.u32 4294901760, %v2960_v20  ;;  %v52_v1 = vld [vmem:[%s5014_s2 + $0x58] sm:$0xff] }
  0x2b   :  { %118 = vmatmul.f32.gmra.mxu0 %v3243_v13  ;;  %251 = vmatmul.f32.vlgmr.msra.gmra.mxu1 %v3071_v2  ;;  %5102 = vst [vmem:[#allocation12_spill] sm:$0xff] %v3288_v54  ;;  %v3305_v32 = vand.u32 4294901760, %v39_v31 }
  0x2c   :  { %513 = vmatpush.msrb.mxu1 %v2913_v3  ;;  %434 = vmatpush.msrb.mxu0 %v5101_v6  ;;  %v56_v3 = vld [vmem:[%s5014_s2 + $0x78] sm:$0xff]  ;;  %5103 = vst [vmem:[#allocation13_spill] sm:$0xff] %v3295_v16  ;;  %v3300_v6 = vand.u32 4294901760, %v3274_v15 }
  0x2d   :  { %395 = vmatmul.f32.gmra.mxu3 %v3188_v33  ;;  %574 = vmatpush.msrb.mxu2 %v3163_v34  ;;  %v3308_v33 = vsub.f32 %v60_v14, %v3277_v8  ;;  %v3315_v19 = vand.u32 4294901760, %v56_v3  ;;  %v3323_v14 = vsub.f32 %v58_v36, %v3288_v54  ;;  %v3337_v36 = vsub.f32 %v39_v31, %v3305_v32 }
  0x2e   :  { %515 = vmatpush.msrb.mxu1 %v2915_v4  ;;  %330 = vmatmul.f32.gmra.mxu2 %v3158_v37  ;;  %5105 = vst [vmem:[#allocation14_spill] sm:$0xff] %v3300_v6  ;;  %v54_v4 = vld [vmem:[%s5014_s2 + $0x68] sm:$0xff]  ;;  %v132_v20 = vsub.f32 %v3274_v15, %v3300_v6  ;;  %v3352_v31 = vand.u32 4294901760, %v52_v1 }
  0x2f   :  { %438 = vmatpush.msrb.mxu0 %v5104_v38  ;;  %667 = vmatpush.msrb.mxu3 %v666_v44  ;;  %v5107_v44 = vand.u32 4294901760, %v3264_v22  ;;  %v3347_v37 = vsub.f32 %v56_v3, %v3315_v19 }
  0x30   :  { %517 = vmatpush.msrb.mxu1 %v2917_v5  ;;  %576 = vmatpush.msrb.mxu2 %v3173_v42  ;;  %v3330_v5 = vand.u32 4294901760, %v54_v4  ;;  %v3364_v3 = vand.u32 4294901760, %v132_v20  ;;  %v5112_v20 = vand.u32 4294901760, %v3007_v40 }
  0x31   :  { %442 = vmatpush.msrb.mxu0 %v5106_v24  ;;  %673 = vmatpush.msrb.mxu3 %v672_v23  ;;  %v683_v38 = vsub.f32 %v3264_v22, %v5107_v44  ;;  %v678_v23 = vand.u32 4294901760, %v677_v30  ;;  %v5108_v44 = vand.u32 4294901760, %v2963_v21  ;;  %v40_v30 = vld [vmem:[%s5016_s0 + $0x28] sm:$0xff] }
  0x32   :  { %519 = vmatpush.msrb.mxu1 %v2928_v9  ;;  %578 = vmatpush.msrb.mxu2 %v3226_v50  ;;  %v50_v9 = vld [vmem:[%s5014_s2 + $0x48] sm:$0xff]  ;;  %5109 = vst [vmem:[#allocation15_spill] sm:$0xff] %v3364_v3 }
  0x33   :  { %126 = vmatmul.f32.gmra.mxu0 %v3295_v16  ;;  %255 = vmatmul.f32.gmra.mxu1 %v3117_v47  ;;  %v684_v24 = vand.u32 4294901760, %v683_v38  ;;  %v3362_v21 = vand.u32 4294901760, %v50_v9  ;;  %v5111_v38 = vand.u32 4294901760, %v3308_v33 }
  0x34   :  { %521 = vmatpush.msrb.mxu1 %v2930_v10  ;;  %446 = vmatpush.msrb.mxu0 %v5108_v44  ;;  %v3360_v10 = vsub.f32 %v54_v4, %v3330_v5  ;;  %v5110_v44 = vand.u32 4294901760, %v2980_v29  ;;  %v5057_v29 = vand.u32 4294901760, %v3347_v37  ;;  %v3383_v4 = vsub.f32 %v52_v1, %v3352_v31 }
  0x35   :  { %401 = vmatmul.f32.gmra.mxu3 %v3239_v27  ;;  %580 = vmatpush.msrb.mxu2 %v3235_v60  ;;  %v3369_v27 = vand.u32 4294901760, %v3337_v36  ;;  %v689_v16 = vsub.f32 %v3308_v33, %v5111_v38  ;;  %v46_v38 = vld [vmem:[%s5014_s2 + $0x28] sm:$0xff]  ;;  %v3399_v40 = vsub.f32 %v50_v9, %v3362_v21 }
  0x36   :  { %335 = vmatmul.f32.gmra.mxu2 %v3213_v51  ;;  %523 = vmatpush.msrb.mxu1 %v2932_v11  ;;  %v3374_v51 = vand.u32 4294901760, %v40_v30  ;;  %v48_v11 = vld [vmem:[%s5014_s2 + $0x38] sm:$0xff]  ;;  %v701_v9 = vsub.f32 %v3347_v37, %v5057_v29 }
  0x37   :  { %450 = vmatpush.msrb.mxu0 %v5110_v44  ;;  %679 = vmatpush.msrb.mxu3 %v678_v23  ;;  %v5113_v23 = vand.u32 4294901760, %v3323_v14  ;;  %v3396_v1 = vand.u32 4294901760, %v48_v11 }
  0x38   :  { %525 = vmatpush.msrb.mxu1 %v2951_v17  ;;  %582 = vmatpush.msrb.mxu2 %v3277_v8  ;;  %v5114_v17 = vand.u32 4294901760, %v3015_v43  ;;  %v42_v43 = vld [vmem:[%s5014_s2 + $0x8] sm:$0xff] }
  0x39   :  { %454 = vmatpush.msrb.mxu0 %v5112_v20  ;;  %685 = vmatpush.msrb.mxu3 %v684_v24  ;;  %v695_v44 = vsub.f32 %v3323_v14, %v5113_v23  ;;  %v140_v24 = vsub.f32 %v3337_v36, %v3369_v27  ;;  %v690_v20 = vand.u32 4294901760, %v689_v16  ;;  %v3406_v23 = vsub.f32 %v40_v30, %v3374_v51 }
  0x3a   :  { %527 = vmatpush.msrb.mxu1 %v2970_v25  ;;  %584 = vmatpush.msrb.mxu2 %v3288_v54  ;;  %v44_v25 = vld [vmem:[%s5014_s2 + $0x18] sm:$0xff]  ;;  %v3418_v54 = vand.u32 4294901760, %v46_v38  ;;  %v5116_v30 = vand.u32 4294901760, %v3360_v10  ;;  %s2847_s2 = smov 120  }
  0x3b   :  { %134 = vmatmul.f32.gmra.mxu0 %v3364_v3  ;;  %259 = vmatmul.f32.gmra.mxu1 %v3180_v53  ;;  %v696_v16 = vand.u32 4294901760, %v695_v44  ;;  %v3433_v3 = vsub.f32 %v48_v11, %v3396_v1  ;;  %v3437_v44 = vand.u32 4294901760, %v140_v24  ;;  %v3452_v24 = vand.u32 4294901760, %v42_v43 }
  0x3c   :  { %458 = vmatpush.msrb.mxu0 %v5114_v17  ;;  %529 = vmatpush.msrb.mxu1 %v2977_v28  ;;  %v5115_v28 = vand.u32 4294901760, %v3036_v52  ;;  %v707_v17 = vsub.f32 %v3360_v10, %v5116_v30  ;;  %v5117_v52 = vand.u32 4294901760, %v3054_v59  ;;  %v5118_v30 = vand.u32 4294901760, %v3383_v4 }
  0x3d   :  { %407 = vmatmul.f32.gmra.mxu3 %v3300_v6  ;;  %586 = vmatpush.msrb.mxu2 %v3315_v19  ;;  %v3435_v6 = vand.u32 4294901760, %v44_v25  ;;  %v3450_v29 = vsub.f32 %v46_v38, %v3418_v54 }
  0x3e   :  { %340 = vmatmul.f32.gmra.mxu2 %v3274_v15  ;;  %462 = vmatpush.msrb.mxu0 %v5115_v28  ;;  %v3441_v15 = vand.u32 4294901760, %v3406_v23  ;;  %v702_v28 = vand.u32 4294901760, %v701_v9  ;;  %v713_v11 = vsub.f32 %v3383_v4, %v5118_v30  ;;  %v708_v59 = vand.u32 4294901760, %v707_v17 }
  0x3f   :  { %531 = vmatpush.msrb.mxu1 %v2998_v35  ;;  %691 = vmatpush.msrb.mxu3 %v690_v20  ;;  %v5119_v35 = vand.u32 4294901760, %v3059_v61  ;;  %v5120_v20 = vand.u32 4294901760, %v3399_v40  ;;  %v3463_v38 = vsub.f32 %v44_v25, %v3435_v6  ;;  %v5121_v61 = vand.u32 4294901760, %v3086_v18 }
  0x40   :  { %466 = vmatpush.msrb.mxu0 %v5117_v52  ;;  %588 = vmatpush.msrb.mxu2 %v3330_v5  ;;  %v724_v52 = vand.u32 4294901760, %v3433_v3  ;;  %v730_v17 = vand.u32 4294901760, %v3450_v29  ;;  %v3473_v30 = vsub.f32 %v42_v43, %v3452_v24 }
  0x41   :  { %697 = vmatpush.msrb.mxu3 %v696_v16  ;;  %533 = vmatpush.msrb.mxu1 %v3021_v46  ;;  %v719_v9 = vsub.f32 %v3399_v40, %v5120_v20  ;;  %v148_v46 = vsub.f32 %v3406_v23, %v3441_v15  ;;  %v714_v16 = vand.u32 4294901760, %v713_v11  ;;  %v736_v18 = vand.u32 4294901760, %v3463_v38 }
  0x42   :  { %470 = vmatpush.msrb.mxu0 %v5119_v35  ;;  %590 = vmatpush.msrb.mxu2 %v3352_v31  ;;  %v5122_v35 = vand.u32 4294901760, %v3110_v41  ;;  %v742_v43 = vand.u32 4294901760, %v3473_v30 }
  0x43   :  { %142 = vmatmul.f32.gmra.mxu0 %v3437_v44  ;;  %263 = vmatmul.f32.gmra.mxu1 %v3246_v45  ;;  %v720_v25 = vand.u32 4294901760, %v719_v9  ;;  %v3482_v11 = vand.u32 4294901760, %v148_v46  ;;  %v737_v20 = vsub.f32 %v3463_v38, %v736_v18 }
  0x44   :  { %703 = vmatpush.msrb.mxu3 %v702_v28  ;;  %474 = vmatpush.msrb.mxu0 %v5121_v61  ;;  %v725_v28 = vsub.f32 %v3433_v3, %v724_v52  ;;  %v743_v9 = vsub.f32 %v3473_v30, %v742_v43 }
  0x45   :  { %413 = vmatmul.f32.gmra.mxu3 %v3369_v27  ;;  %535 = vmatpush.msrb.mxu1 %v3028_v48  ;;  %v731_v48 = vsub.f32 %v3450_v29, %v730_v17  ;;  %v738_v46 = vand.u32 4294901760, %v737_v20 }
  0x46   :  { %345 = vmatmul.f32.gmra.mxu2 %v3337_v36  ;;  %709 = vmatpush.msrb.mxu3 %v708_v59  ;;  %v5123_v59 = vand.u32 4294901760, %v3127_v55  ;;  %v726_v41 = vand.u32 4294901760, %v725_v28  ;;  %v744_v61 = vand.u32 4294901760, %v743_v9  ;;  %v5127_v28 = vld [vmem:[#allocation7_spill] sm:$0xff] }
  0x47   :  { %478 = vmatpush.msrb.mxu0 %v5122_v35  ;;  %592 = vmatpush.msrb.mxu2 %v3362_v21  ;;  %v732_v55 = vand.u32 4294901760, %v731_v48 }
  0x48   :  { %715 = vmatpush.msrb.mxu3 %v714_v16  ;;  %537 = vmatpush.msrb.mxu1 %v3051_v58  ;;  %v5124_v58 = vand.u32 4294901760, %v3145_v7  ;;  %v2833_v7 = vld [vmem:[%s5015_s4 + $0x4] ss:$0 sm:$0xff]  ;;  %v2834_v16 = vld [vmem:[%s5015_s4 + $0x5] ss:$0 sm:$0xff] }
  0x49   :  { %482 = vmatpush.msrb.mxu0 %v5123_v59  ;;  %594 = vmatpush.msrb.mxu2 %v3396_v1 }
  0x4a   :  { %721 = vmatpush.msrb.mxu3 %v720_v25  ;;  %539 = vmatpush.msrb.mxu1 %v3068_v0  ;;  %v2832_v0 = vld [vmem:[%s5015_s4 + $0x7] ss:$0 sm:$0xff]  ;;  %v2835_v25 = vld [vmem:[%s5015_s4 + $0x1] ss:$0 sm:$0xff] }
  0x4b   :  { %150 = vmatmul.f32.gmra.mxu0 %v3482_v11  ;;  %267 = vmatmul.f32.gmra.mxu1 %v3305_v32 }
  0x4c   :  { %486 = vmatpush.msrb.mxu0 %v5124_v58  ;;  %596 = vmatpush.msrb.mxu2 %v3418_v54  ;;  %v1065_v58 = vld [vmem:[%s5017_s1] sm:$0xff] }
  0x4d   :  { %419 = vmatmul.f32.gmra.mxu3 %v3441_v15  ;;  %541 = vmatpush.msrb.mxu1 %v3082_v12  ;;  %v5125_v12 = vand.u32 4294901760, %v3140_v63 }
  0x4e   :  { %350 = vmatmul.f32.gmra.mxu2 %v3406_v23  ;;  %727 = vmatpush.msrb.mxu3 %v726_v41 }
  0x4f   :  { %598 = vmatpush.msrb.mxu2 %v3435_v6  ;;  %543 = vmatpush.msrb.mxu1 %v3107_v39  ;;  %v5126_v39 = vld [vmem:[#allocation5_spill] sm:$0xff] }
  0x50   :  { %733 = vmatpush.msrb.mxu3 %v732_v55  ;;  %1233 = vrot.lane.b32.xlu1 %v2832_v0, %s2845_s11  ;;  %v5128_v35 = vand.u32 4294901760, %v5126_v39  ;;  %v1077_v55 = vld [vmem:[%s5018_s3] sm:$0xff] }
  0x51   :  { %600 = vmatpush.msrb.mxu2 %v3452_v24  ;;  %1193 = vrot.lane.b32.xlu0 %v2833_v7, %s2845_s11 }
  0x52   :  { %739 = vmatpush.msrb.mxu3 %v738_v46  ;;  %773 = vmatpush.msra.mxu0 %v3140_v63  ;;  %v5129_v63 = vand.u32 4294901760, %v3191_v62  ;;  %v1089_v46 = vadd.f32 %v1077_v55, %v1065_v58 }
  0x53   :  { %271 = vmatmul.f32.gmra.mxu1 %v3374_v51  ;;  %488 = vmatmul.f32.vlgmr.msrb.gmra.mxu0 %v3071_v2 }
  0x54   :  { %745 = vmatpush.msrb.mxu3 %v744_v61  ;;  %922 = vmatpush.msra.mxu2 %v5125_v12 }
  0x55   :  { %747 = vmatmul.f32.vlgmr.msrb.gmra.mxu3 %v3071_v2  ;;  %776 = vmatpush.msra.mxu0 %v5126_v39 }
  0x56   :  { %606 = vmatmul.f32.vlgmr.msrb.gmra.mxu2 %v5127_v28  ;;  %1009 = vmatpush.msra.mxu3 %v3119_v49 }
  0x57   :  { %926 = vmatpush.msra.mxu2 %v5128_v35  ;;  %779 = vmatpush.msra.mxu0 %v3191_v62  ;;  %v5131_v62 = vand.u32 4294901760, %v3252_v26 }
  0x58   :  { %851 = vmatpush.msra.mxu1 %v3119_v49  ;;  %1011 = vmatpush.msra.mxu3 %v3129_v56  ;;  %v5130_v49 = vand.u32 4294901760, %v3206_v57 }
  0x59   :  { %1300 = vrot.lane.b32.xlu1 %v2834_v16, %s2846_s16  ;;  %1166 = vrot.lane.b32.xlu0 %v2835_v25, %s2845_s11 }
  0x5a   :  { %782 = vmatpush.msra.mxu0 %v3206_v57  ;;  %930 = vmatpush.msra.mxu2 %v5129_v63  ;;  %v5139_v57 = vand.u32 4294901760, %v3360_v10 }
  0x5b   :  { %492 = vmatmul.f32.gmra.mxu0 %v3117_v47  ;;  %545 = vmatmul.f32.vlgmr.msrb.gmra.mxu1 %v3071_v2 }
  0x5c   :  { %853 = vmatpush.msra.mxu1 %v3129_v56  ;;  %785 = vmatpush.msra.mxu0 %v3252_v26  ;;  %v5132_v56 = vand.u32 4294901760, %v3264_v22  ;;  %v5134_v26 = vld [vmem:[#allocation13_spill] sm:$0xff] }
  0x5d   :  { %751 = vmatmul.f32.gmra.mxu3 %v3117_v47  ;;  %934 = vmatpush.msra.mxu2 %v5130_v49 }
  0x5e   :  { %614 = vmatmul.f32.gmra.mxu2 %v3243_v13  ;;  %1013 = vmatpush.msra.mxu3 %v3163_v34  ;;  %v5133_v13 = vand.u32 4294901760, %v3308_v33 }
  0x5f   :  { %788 = vmatpush.msra.mxu0 %v3264_v22  ;;  %855 = vmatpush.msra.mxu1 %v3163_v34  ;;  %v2836_v34 = vld [vmem:[%s5015_s4 + $0x2] ss:$0 sm:$0xff]  ;;  %v5141_v22 = vand.u32 4294901760, %v3399_v40 }
  0x60   :  { %1015 = vmatpush.msra.mxu3 %v3173_v42  ;;  %938 = vmatpush.msra.mxu2 %v5131_v62  ;;  %v1067_v62 = vld [vmem:[%s5017_s1 + $0x10] sm:$0xff] }
  0x61   :  { %791 = vmatpush.msra.mxu0 %v3308_v33  ;;  %857 = vmatpush.msra.mxu1 %v3173_v42  ;;  %v5135_v42 = vand.u32 4294901760, %v3323_v14  ;;  %v5136_v33 = vand.u32 4294901760, %v3347_v37 }
  0x62   :  { %942 = vmatpush.msra.mxu2 %v5132_v56  ;;  %1017 = vmatpush.msra.mxu3 %v3226_v50  ;;  %v1079_v56 = vld [vmem:[%s5018_s3 + $0x10] sm:$0xff] }
  0x63   :  { %496 = vmatmul.f32.gmra.mxu0 %v3180_v53  ;;  %549 = vmatmul.f32.gmra.mxu1 %v3117_v47 }
  0x64   :  { %794 = vmatpush.msra.mxu0 %v3323_v14  ;;  %859 = vmatpush.msra.mxu1 %v3226_v50  ;;  %v5137_v50 = vld [vmem:[#allocation12_spill] sm:$0xff] }
  0x65   :  { %755 = vmatmul.f32.gmra.mxu3 %v3180_v53  ;;  %946 = vmatpush.msra.mxu2 %v5133_v13  ;;  %v5144_v14 = vld [vmem:[#allocation4_spill] sm:$0xff] }
  0x66   :  { %622 = vmatmul.f32.gmra.mxu2 %v5134_v26  ;;  %797 = vmatpush.msra.mxu0 %v3347_v37  ;;  %v5140_v37 = vand.u32 4294901760, %v3383_v4 }
  0x67   :  { %1019 = vmatpush.msra.mxu3 %v3235_v60  ;;  %861 = vmatpush.msra.mxu1 %v3235_v60  ;;  %v5138_v60 = vld [vmem:[#allocation15_spill] sm:$0xff] }
  0x68   :  { %800 = vmatpush.msra.mxu0 %v3360_v10  ;;  %950 = vmatpush.msra.mxu2 %v5135_v42  ;;  %v5148_v10 = vld [vmem:[#allocation10_spill] sm:$0xff] }
  0x69   :  { %1021 = vmatpush.msra.mxu3 %v3277_v8  ;;  %863 = vmatpush.msra.mxu1 %v3277_v8  ;;  %v2837_v8 = vld [vmem:[%s5015_s4 + $0x8] ss:$0 sm:$0xff] }
  0x6a   :  { %803 = vmatpush.msra.mxu0 %v3383_v4  ;;  %954 = vmatpush.msra.mxu2 %v5136_v33  ;;  %v1091_v33 = vadd.f32 %v1079_v56, %v1067_v62 }
  0x6b   :  { %500 = vmatmul.f32.gmra.mxu0 %v3246_v45  ;;  %553 = vmatmul.f32.gmra.mxu1 %v3180_v53 }
  0x6c   :  { %1023 = vmatpush.msra.mxu3 %v5137_v50  ;;  %1273 = vrot.lane.b32.xlu2 %v2836_v34, %s2846_s16 }
  0x6d   :  { %759 = vmatmul.f32.gmra.mxu3 %v3246_v45  ;;  %806 = vmatpush.msra.mxu0 %v3399_v40 }
  0x6e   :  { %630 = vmatmul.f32.gmra.mxu2 %v5138_v60  ;;  %865 = vmatpush.msra.mxu1 %v5137_v50 }
  0x6f   :  { %958 = vmatpush.msra.mxu2 %v5139_v57  ;;  %1025 = vmatpush.msra.mxu3 %v3315_v19 }
  0x70   :  { %809 = vmatpush.msra.mxu0 %v3433_v3  ;;  %867 = vmatpush.msra.mxu1 %v3315_v19  ;;  %v5142_v19 = vld [vmem:[#allocation3_spill] sm:$0xff] }
  0x71   :  { %962 = vmatpush.msra.mxu2 %v5140_v37  ;;  %1027 = vmatpush.msra.mxu3 %v3330_v5  ;;  %v3717_v37 = vld [vmem:[%s5015_s4 + $0x3] ss:$0 sm:$0xff] }
  0x72   :  { %812 = vmatpush.msra.mxu0 %v3450_v29  ;;  %869 = vmatpush.msra.mxu1 %v3330_v5  ;;  %v5146_v5 = vld [vmem:[#allocation8_spill] sm:$0xff] }
  0x73   :  { %504 = vmatmul.f32.gmra.mxu0 %v3305_v32  ;;  %557 = vmatmul.f32.gmra.mxu1 %v3246_v45 }
  0x74   :  { %966 = vmatpush.msra.mxu2 %v5141_v22  ;;  %1029 = vmatpush.msra.mxu3 %v3352_v31 }
  0x75   :  { %763 = vmatmul.f32.gmra.mxu3 %v3305_v32  ;;  %815 = vmatpush.msra.mxu0 %v3463_v38 }
  0x76   :  { %638 = vmatmul.f32.gmra.mxu2 %v3437_v44  ;;  %871 = vmatpush.msra.mxu1 %v3352_v31  ;;  %v5147_v31 = vld [vmem:[#allocation11_spill] sm:$0xff] }
  0x77   :  { %970 = vmatpush.msra.mxu2 %v724_v52  ;;  %1031 = vmatpush.msra.mxu3 %v3362_v21 }
  0x78   :  { %1340 = vrot.lane.b32.xlu2 %v2837_v8, %s2846_s16  ;;  %818 = vmatpush.msra.mxu0 %v3473_v30 }
  0x79   :  { %873 = vmatpush.msra.mxu1 %v3362_v21  ;;  %974 = vmatpush.msra.mxu2 %v730_v17 }
  0x7a   :  { %1033 = vmatpush.msra.mxu3 %v3396_v1 }
  0x7b   :  { %508 = vmatmul.f32.gmra.mxu0 %v3374_v51  ;;  %561 = vmatmul.f32.gmra.mxu1 %v3305_v32 }
  0x7c   :  { %875 = vmatpush.msra.mxu1 %v3396_v1  ;;  %978 = vmatpush.msra.mxu2 %v736_v18 }
  0x7d   :  { %767 = vmatmul.f32.gmra.mxu3 %v3374_v51 }
  0x7e   :  { %646 = vmatmul.f32.gmra.mxu2 %v3482_v11  ;;  %1035 = vmatpush.msra.mxu3 %v3418_v54 }
  0x7f   :  { %877 = vmatpush.msra.mxu1 %v3418_v54  ;;  %982 = vmatpush.msra.mxu2 %v742_v43  ;;  %v5143_v54 = vld [vmem:[#allocation6_spill] sm:$0xff] }
  0x80   :  { %1037 = vmatpush.msra.mxu3 %v3435_v6 }
  0x81   :  { %879 = vmatpush.msra.mxu1 %v3435_v6  ;;  %v5145_v6 = vld [vmem:[#allocation9_spill] sm:$0xff] }
  0x82   :  { %1039 = vmatpush.msra.mxu3 %v3452_v24 }
  0x83   :  { %565 = vmatmul.f32.gmra.mxu1 %v3374_v51  ;;  %821 = vmatmul.f32.vlgmr.msra.gmra.mxu0 %v5142_v19 }
  0x84   :  { %881 = vmatpush.msra.mxu1 %v3452_v24 }
  0x85   :  { %1041 = vmatmul.f32.vlgmr.msra.gmra.mxu3 %v3071_v2 }
  0x86   :  { %984 = vmatmul.f32.vlgmr.msra.gmra.mxu2 %v3071_v2 }
  0x8b   :  { %826 = vmatmul.f32.gmra.mxu0 %v5143_v54  ;;  %885 = vmatmul.f32.vlgmr.msra.gmra.mxu1 %v5144_v14  ;;  %v3728_v14 = vld [vmem:[%s5015_s4 + $0x6] ss:$0 sm:$0xff] }
  0x8d   :  { %1045 = vmatmul.f32.gmra.mxu3 %v3117_v47 }
  0x8e   :  { %988 = vmatmul.f32.gmra.mxu2 %v3117_v47  ;;  %v5149_v47 = vld [vmem:[#allocation14_spill] sm:$0xff] }
  0x93   :  { %831 = vmatmul.f32.gmra.mxu0 %v5145_v6  ;;  %891 = vmatmul.f32.gmra.mxu1 %v5146_v5  ;;  %v1069_v5 = vld [vmem:[%s5017_s1 + $0x20] sm:$0xff] }
  0x95   :  { %1049 = vmatmul.f32.gmra.mxu3 %v3180_v53 }
  0x96   :  { %992 = vmatmul.f32.gmra.mxu2 %v3180_v53 }
  0x9b   :  { %836 = vmatmul.f32.gmra.mxu0 %v5147_v31  ;;  %897 = vmatmul.f32.gmra.mxu1 %v5148_v10  ;;  %v1081_v31 = vld [vmem:[%s5018_s3 + $0x20] sm:$0xff] }
  0x9d   :  { %1053 = vmatmul.f32.gmra.mxu3 %v3246_v45 }
  0x9e   :  { %996 = vmatmul.f32.gmra.mxu2 %v3246_v45 }
  0xa0   :  { %v111_v2 = vpop.f32.mrf.mxu0 }
  0xa3   :  { %841 = vmatmul.f32.gmra.mxu0 %v3337_v36  ;;  %903 = vmatmul.f32.gmra.mxu1 %v5149_v47 }
  0xa5   :  { %1057 = vmatmul.f32.gmra.mxu3 %v3305_v32 }
  0xa6   :  { %1000 = vmatmul.f32.gmra.mxu2 %v3305_v32 }
  0xa8   :  { %v119_v21 = vpop.f32.mrf.mxu0  ;;  %v252_v3 = vpop.f32.mrf.mxu1 }
  0xa9   :  { %v326_v53 = vpop.f32.mrf.mxu2  ;;  %v390_v29 = vpop.f32.mrf.mxu3  ;;  %v253_v18 = vadd.f32 %v252_v3, %v111_v2 }
  0xab   :  { %846 = vmatmul.f32.gmra.mxu0 %v3406_v23  ;;  %909 = vmatmul.f32.gmra.mxu1 %v3369_v27  ;;  %v327_v59 = vadd.f32 %v326_v53, %v253_v18 }
  0xad   :  { %1061 = vmatmul.f32.gmra.mxu3 %v3374_v51  ;;  %v391_v9 = vadd.f32 %v390_v29, %v327_v59 }
  0xae   :  { %1004 = vmatmul.f32.gmra.mxu2 %v3374_v51 }
  0xb0   :  { %v127_v45 = vpop.f32.mrf.mxu0  ;;  %v256_v36 = vpop.f32.mrf.mxu1 }
  0xb1   :  { %v331_v4 = vpop.f32.mrf.mxu2  ;;  %v396_v1 = vpop.f32.mrf.mxu3  ;;  %v257_v0 = vadd.f32 %v256_v36, %v119_v21 }
  0xb3   :  { %915 = vmatmul.f32.gmra.mxu1 %v3441_v15  ;;  %v332_v39 = vadd.f32 %v331_v4, %v257_v0  ;;  %v3759_v4 = vld [vmem:[%s5015_s4] ss:$0 sm:$0xff] }
  0xb5   :  { %v397_v13 = vadd.f32 %v396_v1, %v332_v39 }
  0xb8   :  { %v3663_v40 = vpop.f32.mrf.mxu0  ;;  %v260_v32 = vpop.f32.mrf.mxu1 }
  0xb9   :  { %v336_v44 = vpop.f32.mrf.mxu2  ;;  %v402_v24 = vpop.f32.mrf.mxu3  ;;  %v261_v49 = vadd.f32 %v260_v32, %v127_v45  ;;  %v1093_v45 = vadd.f32 %v1081_v31, %v1069_v5 }
  0xbb   :  { %v337_v50 = vadd.f32 %v336_v44, %v261_v49 }
  0xbd   :  { %v403_v2 = vadd.f32 %v402_v24, %v337_v50 }
  0xc0   :  { %v3665_v52 = vpop.f32.mrf.mxu0  ;;  %v3667_v23 = vpop.f32.mrf.mxu1 }
  0xc1   :  { %v3669_v27 = vpop.f32.mrf.mxu2  ;;  %v3671_v38 = vpop.f32.mrf.mxu3  ;;  %v265_v58 = vadd.f32 %v3667_v23, %v3663_v40 }
  0xc2   :  { %v3709_v26 = vpop.permute.xlu1 %1233 }
  0xc3   :  { %v3681_v11 = vpop.permute.xlu0 %1193 }
  0xc6   :  { %v3723_v54 = vpop.permute.xlu2 %1273 }
  0xc8   :  { %v3673_v51 = vpop.f32.mrf.mxu0  ;;  %v3675_v17 = vpop.f32.mrf.mxu1 }
  0xc9   :  { %v3677_v30 = vpop.f32.mrf.mxu2  ;;  %v3679_v15 = vpop.f32.mrf.mxu3  ;;  %v269_v50 = vadd.f32 %v3675_v17, %v3665_v52 }
  0xcb   :  { %v3699_v35 = vpop.permute.xlu0 %1166  ;;  %v3767_v44 = vpop.permute.xlu1 %1300 }
  0xd0   :  { %v3683_v48 = vpop.f32.mrf.mxu1  ;;  %v489_v43 = vpop.f32.mrf.mxu0 }
  0xd1   :  { %v3685_v41 = vpop.f32.mrf.mxu2  ;;  %v3687_v20 = vpop.f32.mrf.mxu3  ;;  %v490_v7 = vadd.f32 %v489_v43, %v391_v9 }
  0xd8   :  { %v493_v61 = vpop.f32.mrf.mxu0  ;;  %v546_v12 = vpop.f32.mrf.mxu1 }
  0xd9   :  { %v547_v16 = vadd.f32 %v546_v12, %v490_v7  ;;  %v3695_v25 = vpop.f32.mrf.mxu2  ;;  %v3697_v28 = vpop.f32.mrf.mxu3  ;;  %v494_v34 = vadd.f32 %v493_v61, %v397_v13 }
  0xdb   :  { %v3701_v63 = vadd.f32 %v1089_v46, %v547_v16 }
  0xdd   :  { %v1169_v42 = vmul.f32 %v3699_v35, %v3701_v63  ;;  %v1236_v10 = vmul.f32 %v3709_v26, %v3701_v63  ;;  %v1133_v47 = vmul.f32 %v3717_v37, %v3701_v63  ;;  %v1276_v3 = vmul.f32 %v3723_v54, %v3701_v63 }
  0xde   :  { %v1196_v36 = vmul.f32 %v3681_v11, %v3701_v63  ;;  %v1149_v32 = vmul.f32 %v3728_v14, %v3701_v63  ;;  %v1131_v49 = vmul.f32 %v3759_v4, %v3701_v63 }
  0xdf   :  { %1177 = vrot.lane.b32.xlu0 %v1169_v42, %s2847_s2  ;;  %v1248_v18 = vrot.slane %v1236_v10, 2  ;;  %v1140_v7 = vrot.slane %v1133_v47, 1  ;;  %v1303_v42 = vmul.f32 %v3767_v44, %v3701_v63 }
  0xe0   :  { %v497_v60 = vpop.f32.mrf.mxu0  ;;  %v550_v57 = vpop.f32.mrf.mxu1  ;;  %v1156_v62 = vrot.slane %v1149_v32, 2  ;;  %v1208_v13 = vrot.slane %v1196_v36, 1 }
  0xe1   :  { %v551_v22 = vadd.f32 %v550_v57, %v494_v34  ;;  %v3719_v8 = vpop.f32.mrf.mxu2  ;;  %v3721_v19 = vpop.f32.mrf.mxu3  ;;  %v498_v24 = vadd.f32 %v497_v60, %v403_v2 }
  0xe2   :  { %v3798_v60 = vpop.permute.xlu2 %1340 }
  0xe3   :  { %v3730_v6 = vadd.f32 %v1091_v33, %v551_v22  ;;  %v342_v33 = vadd.f32 %v3669_v27, %v265_v58 }
  0xe5   :  { %v1171_v21 = vmul.f32 %v3699_v35, %v3730_v6  ;;  %v3748_v53 = vmul.f32 %v3709_v26, %v3730_v6  ;;  %v3752_v29 = vmul.f32 %v3681_v11, %v3730_v6  ;;  %v3763_v1 = vmul.f32 %v3717_v37, %v3730_v6 }
  0xe6   :  { %v1150_v59 = vmul.f32 %v3728_v14, %v3730_v6  ;;  %v3787_v40 = vmul.f32 %v3767_v44, %v3730_v6  ;;  %v1278_v31 = vmul.f32 %v3723_v54, %v3730_v6  ;;  %v3807_v2 = vmul.f32 %v3798_v60, %v3730_v6 }
  0xe7   :  { %1181 = vrot.lane.b32.xlu2 %v1171_v21, %s2847_s2  ;;  %1284 = vrot.lane.b32.xlu0 %v1276_v3, %s2848_s18  ;;  %v1249_v43 = vrot.slane %v3748_v53, 2  ;;  %v1141_v0 = vrot.slane %v3763_v1, 1  ;;  %v1209_v16 = vrot.slane %v3752_v29, 1  ;;  %v1315_v21 = vrot.slane %v1303_v42, 1 }
  0xe8   :  { %v501_v55 = vpop.f32.mrf.mxu0  ;;  %v554_v9 = vpop.f32.mrf.mxu1  ;;  %v1157_v23 = vrot.slane %v1150_v59, 2  ;;  %v1316_v10 = vrot.slane %v3787_v40, 1  ;;  %v1343_v3 = vmul.f32 %v3798_v60, %v3701_v63  ;;  %v409_v29 = vadd.f32 %v3671_v38, %v342_v33  ;;  %v1083_v59 = vld [vmem:[%s5018_s3 + $0x30] sm:$0xff] }
  0xe9   :  { %v555_v46 = vadd.f32 %v554_v9, %v498_v24  ;;  %v3777_v61 = vpop.f32.mrf.mxu2  ;;  %v1250_v12 = vsel %vm1155_vm0, %v1248_v18, %v1249_v43  ;;  %v3782_v39 = vpop.f32.mrf.mxu3  ;;  %v1142_v34 = vsel %vm1139_vm1, %v1140_v7, %v1141_v0  ;;  %v1210_v5 = vsel %vm1139_vm1, %v1208_v13, %v1209_v16  ;;  %v1071_v18 = vld [vmem:[%s5017_s1 + $0x30] sm:$0xff] }
  0xea   :  { %1258 = vrot.lane.b32.xlu1 %v1250_v12, %s2847_s2  ;;  %v1147_v57 = vadd.f32 %v1142_v34, %v1131_v49  ;;  %v1158_v22 = vsel %vm1155_vm0, %v1156_v62, %v1157_v23  ;;  %v1317_v38 = vsel %vm1139_vm1, %v1315_v21, %v1316_v10  ;;  %v1132_v7 = vmul.f32 %v3759_v4, %v3730_v6  ;;  %v1085_v6 = vld [vmem:[%s5018_s3 + $0x40] sm:$0xff] }
  0xeb   :  { %v1105_v56 = vadd.f32 %v1093_v45, %v555_v46  ;;  %v347_v45 = vadd.f32 %v3677_v30, %v269_v50  ;;  %v1356_v30 = vrot.slane %v3807_v2, 2  ;;  %v502_v46 = vadd.f32 %v501_v55, %v409_v29  ;;  %v1073_v50 = vld [vmem:[%s5017_s1 + $0x40] sm:$0xff] }
  0xec   :  { %v3812_v47 = vadd.f32 %v1158_v22, %v1147_v57  ;;  %v1355_v62 = vrot.slane %v1343_v3, 2  ;;  %v1095_v33 = vadd.f32 %v1083_v59, %v1071_v18  ;;  %v273_v57 = vadd.f32 %v3683_v48, %v3673_v51 }
  0xed   :  { %v1200_v27 = vmul.f32 %v3681_v11, %v1105_v56  ;;  %v1135_v52 = vmul.f32 %v3717_v37, %v1105_v56  ;;  %v1151_v17 = vmul.f32 %v3728_v14, %v1105_v56  ;;  %v1240_v9 = vmul.f32 %v3709_v26, %v1105_v56 }
  0xee   :  { %v415_v55 = vadd.f32 %v3679_v15, %v347_v45  ;;  %v1097_v15 = vadd.f32 %v1085_v6, %v1073_v50 }
  0xef   :  { %1218 = vrot.lane.b32.xlu2 %v1210_v5, %s2847_s2  ;;  %1288 = vrot.lane.b32.xlu0 %v1278_v31, %s2848_s18  ;;  %v1143_v32 = vrot.slane %v1135_v52, 1  ;;  %v1159_v24 = vrot.slane %v1151_v17, 2  ;;  %v1214_v12 = vrot.slane %v1200_v27, 1  ;;  %v1254_v22 = vrot.slane %v1240_v9, 2 }
  0xf0   :  { %v505_v36 = vpop.f32.mrf.mxu0  ;;  %v558_v1 = vpop.f32.mrf.mxu1  ;;  %v1307_v5 = vmul.f32 %v3767_v44, %v1105_v56  ;;  %v1347_v31 = vmul.f32 %v3798_v60, %v1105_v56  ;;  %v352_v17 = vadd.f32 %v3685_v41, %v273_v57  ;;  %v1087_v41 = vld [vmem:[%s5018_s3 + $0x50] sm:$0xff] }
  0xf1   :  { %v3826_v58 = vpop.f32.mrf.mxu2  ;;  %v3831_v63 = vpop.f32.mrf.mxu3  ;;  %v1144_v49 = vsel %vm1139_vm1, %v1141_v0, %v1143_v32  ;;  %v1160_v42 = vsel %vm1155_vm0, %v1157_v23, %v1159_v24  ;;  %v559_v34 = vadd.f32 %v558_v1, %v502_v46  ;;  %v1357_v0 = vsel %vm1155_vm0, %v1355_v62, %v1356_v30  ;;  %v1075_v1 = vld [vmem:[%s5017_s1 + $0x50] sm:$0xff] }
  0xf2   :  { %1325 = vrot.lane.b32.xlu1 %v1317_v38, %s2848_s18  ;;  %v1148_v13 = vadd.f32 %v1144_v49, %v1132_v7  ;;  %v1215_v23 = vsel %vm1139_vm1, %v1209_v16, %v1214_v12  ;;  %v506_v27 = vadd.f32 %v505_v36, %v415_v55  ;;  %v1255_v56 = vsel %vm1155_vm0, %v1249_v43, %v1254_v22 }
  0xf3   :  { %v3857_v52 = vadd.f32 %v1095_v33, %v559_v34  ;;  %v1321_v29 = vrot.slane %v1307_v5, 1  ;;  %v1361_v45 = vrot.slane %v1347_v31, 2  ;;  %v421_v43 = vadd.f32 %v3687_v20, %v352_v17 }
  0xf4   :  { %v3853_v2 = vadd.f32 %v1160_v42, %v1148_v13  ;;  %v1099_v38 = vadd.f32 %v1087_v41, %v1075_v1 }
  0xf5   :  { %v1383_v53 = vmul.f32 %v3717_v37, %v3857_v52  ;;  %v1322_v32 = vsel %vm1139_vm1, %v1316_v10, %v1321_v29  ;;  %v1362_v24 = vsel %vm1155_vm0, %v1356_v30, %v1361_v45  ;;  %v1413_v40 = vmul.f32 %v3699_v35, %v3857_v52 }
  0xf6   :  { %v1398_v30 = vmul.f32 %v3728_v14, %v3857_v52  ;;  %v1381_v42 = vmul.f32 %v3759_v4, %v3857_v52  ;;  %v1471_v50 = vmul.f32 %v3709_v26, %v3857_v52 }
  0xf7   :  { %1365 = vrot.lane.b32.xlu2 %v1357_v0, %s2848_s18  ;;  %1222 = vrot.lane.b32.xlu0 %v1215_v23, %s2847_s2  ;;  %v1389_v10 = vrot.slane %v1383_v53, 1  ;;  %v1507_v23 = vmul.f32 %v3723_v54, %v3857_v52 }
  0xf8   :  { %v509_v51 = vpop.f32.mrf.mxu0  ;;  %v562_v48 = vpop.f32.mrf.mxu1  ;;  %v1404_v0 = vrot.slane %v1398_v30, 2  ;;  %v1483_v17 = vrot.slane %v1471_v50, 2  ;;  %v749_v30 = vadd.f32 %v3697_v28, %v3695_v25 }
  0xf9   :  { %v563_v21 = vadd.f32 %v562_v48, %v506_v27  ;;  %v3860_v16 = vpop.f32.mrf.mxu2  ;;  %v3865_v3 = vpop.f32.mrf.mxu3  ;;  %v510_v59 = vadd.f32 %v509_v51, %v421_v43 }
  0xfa   :  { %1262 = vrot.lane.b32.xlu1 %v1255_v56, %s2847_s2 }
  0xfb   :  { %v3868_v36 = vadd.f32 %v1097_v15, %v563_v21  ;;  %v1435_v21 = vmul.f32 %v3681_v11, %v3857_v52 }
  0xfd   :  { %v1384_v18 = vmul.f32 %v3717_v37, %v3868_v36  ;;  %v1399_v9 = vmul.f32 %v3728_v14, %v3868_v36  ;;  %v3899_v13 = vmul.f32 %v3709_v26, %v3868_v36  ;;  %v3911_v57 = vmul.f32 %v3798_v60, %v3868_v36 }
  0xfe   :  { %v1415_v22 = vmul.f32 %v3699_v35, %v3868_v36  ;;  %v3922_v27 = vmul.f32 %v3681_v11, %v3868_v36 }
  0xff   :  { %1329 = vrot.lane.b32.xlu2 %v1322_v32, %s2848_s18  ;;  %1369 = vrot.lane.b32.xlu0 %v1362_v24, %s2848_s18  ;;  %v1390_v46 = vrot.slane %v1384_v18, 1  ;;  %v1405_v55 = vrot.slane %v1399_v9, 2  ;;  %v1484_v5 = vrot.slane %v3899_v13, 2  ;;  %v1578_v45 = vrot.slane %v3911_v57, 2 }
 0x100   :  { %v566_v7 = vpop.f32.mrf.mxu1  ;;  %v822_v20 = vpop.f32.mrf.mxu0  ;;  %v3941_v32 = vmul.f32 %v3767_v44, %v3868_v36  ;;  %v1382_v24 = vmul.f32 %v3759_v4, %v3868_v36  ;;  %v1447_v4 = vrot.slane %v1435_v21, 1  ;;  %v1066_v21 = vld [vmem:[%s5017_s1 + $0x8] sm:$0xff] }
 0x101   :  { %v567_v12 = vadd.f32 %v566_v7, %v510_v59  ;;  %v3893_v49 = vpop.f32.mrf.mxu2  ;;  %v3895_v62 = vpop.f32.mrf.mxu3  ;;  %v1391_v34 = vsel %vm1139_vm1, %v1389_v10, %v1390_v46  ;;  %v1406_v15 = vsel %vm1155_vm0, %v1404_v0, %v1405_v55  ;;  %v1448_v59 = vrot.slane %v3922_v27, 1  ;;  %v1080_v27 = vld [vmem:[%s5018_s3 + $0x18] sm:$0xff] }
 0x102   :  { %1421 = vrot.lane.b32.xlu1 %v1413_v40, %s2847_s2  ;;  %v1396_v6 = vadd.f32 %v1391_v34, %v1381_v42  ;;  %v1529_v40 = vmul.f32 %v3767_v44, %v3857_v52  ;;  %v1509_v42 = vmul.f32 %v3723_v54, %v3868_v36  ;;  %v1542_v34 = vrot.slane %v3941_v32, 1 }
 0x103   :  { %v3905_v33 = vadd.f32 %v1099_v38, %v567_v12  ;;  %v753_v12 = vadd.f32 %v3721_v19, %v3719_v8  ;;  %v1565_v19 = vmul.f32 %v3798_v60, %v3857_v52 }
 0x104   :  { %v3934_v1 = vadd.f32 %v1406_v15, %v1396_v6  ;;  %v1449_v6 = vsel %vm1139_vm1, %v1447_v4, %v1448_v59  ;;  %v1541_v25 = vrot.slane %v1529_v40, 1 }
 0x105   :  { %v1569_v31 = vmul.f32 %v3798_v60, %v3905_v33  ;;  %v1385_v51 = vmul.f32 %v3717_v37, %v3905_v33  ;;  %v1400_v48 = vmul.f32 %v3728_v14, %v3905_v33  ;;  %v1485_v14 = vsel %vm1155_vm0, %v1483_v17, %v1484_v5 }
 0x106   :  { %v1577_v17 = vrot.slane %v1565_v19, 2 }
 0x107   :  { %1425 = vrot.lane.b32.xlu2 %v1415_v22, %s2847_s2  ;;  %1515 = vrot.lane.b32.xlu0 %v1507_v23, %s2848_s18  ;;  %v1583_v56 = vrot.slane %v1569_v31, 2  ;;  %v1392_v41 = vrot.slane %v1385_v51, 1  ;;  %v1407_v53 = vrot.slane %v1400_v48, 2  ;;  %v1475_v22 = vmul.f32 %v3709_v26, %v3905_v33  ;;  %v1068_v31 = vld [vmem:[%s5017_s1 + $0x18] sm:$0xff] }
 0x108   :  { %v886_v29 = vpop.f32.mrf.mxu1  ;;  %v827_v18 = vpop.f32.mrf.mxu0 }
 0x109   :  { %v985_v37 = vpop.f32.mrf.mxu2  ;;  %v1042_v43 = vpop.f32.mrf.mxu3  ;;  %v3948_v38 = vsel %vm1155_vm0, %v1578_v45, %v1583_v56  ;;  %v1393_v9 = vsel %vm1139_vm1, %v1390_v46, %v1392_v41  ;;  %v1408_v7 = vsel %vm1155_vm0, %v1405_v55, %v1407_v53  ;;  %v823_v46 = vadd.f32 %v822_v20, %v749_v30  ;;  %v1078_v56 = vld [vmem:[%s5018_s3 + $0x8] sm:$0xff] }
 0x10a   :  { %1493 = vrot.lane.b32.xlu1 %v1485_v14, %s2847_s2  ;;  %v1397_v10 = vadd.f32 %v1393_v9, %v1382_v24  ;;  %v1439_v55 = vmul.f32 %v3681_v11, %v3905_v33  ;;  %v828_v57 = vadd.f32 %v827_v18, %v753_v12  ;;  %v1543_v20 = vsel %vm1139_vm1, %v1541_v25, %v1542_v34  ;;  %v1082_v25 = vld [vmem:[%s5018_s3 + $0x28] sm:$0xff] }
 0x10b   :  { %v887_v28 = vadd.f32 %v886_v29, %v823_v46  ;;  %v1092_v41 = vadd.f32 %v1080_v27, %v1068_v31  ;;  %v1489_v53 = vrot.slane %v1475_v22, 2  ;;  %v1579_v14 = vsel %vm1155_vm0, %v1577_v17, %v1578_v45 }
 0x10c   :  { %v3961_v50 = vadd.f32 %v1408_v7, %v1397_v10  ;;  %v1453_v15 = vrot.slane %v1439_v55, 1  ;;  %v1090_v18 = vadd.f32 %v1078_v56, %v1066_v21  ;;  %v757_v45 = vadd.f32 %v3782_v39, %v3777_v61 }
 0x10d   :  { %v986_v51 = vadd.f32 %v985_v37, %v887_v28  ;;  %v1533_v37 = vmul.f32 %v3767_v44, %v3905_v33  ;;  %v1490_v40 = vsel %vm1155_vm0, %v1484_v5, %v1489_v53  ;;  %v761_v56 = vadd.f32 %v3831_v63, %v3826_v58 }
 0x10e   :  { %5150 = vst [vmem:[#allocation5_spill] sm:$0xff] %v3961_v50  ;;  %v1454_v32 = vsel %vm1139_vm1, %v1448_v59, %v1453_v15 }
 0x10f   :  { %1457 = vrot.lane.b32.xlu2 %v1449_v6, %s2847_s2  ;;  %1519 = vrot.lane.b32.xlu0 %v1509_v42, %s2848_s18  ;;  %v1043_v24 = vadd.f32 %v1042_v43, %v986_v51  ;;  %v1547_v33 = vrot.slane %v1533_v37, 1 }
 0x110   :  { %v892_v8 = vpop.f32.mrf.mxu1  ;;  %v832_v48 = vpop.f32.mrf.mxu0 }
 0x111   :  { %v893_v36 = vadd.f32 %v892_v8, %v828_v57  ;;  %v989_v0 = vpop.f32.mrf.mxu2  ;;  %v1046_v23 = vpop.f32.mrf.mxu3  ;;  %v1102_v10 = vadd.f32 %v1090_v18, %v1043_v24  ;;  %v833_v30 = vadd.f32 %v832_v48, %v757_v45  ;;  %v1548_v46 = vsel %vm1139_vm1, %v1542_v34, %v1547_v33  ;;  %v1070_v57 = vld [vmem:[%s5017_s1 + $0x28] sm:$0xff] }
 0x112   :  { %1551 = vrot.lane.b32.xlu1 %v1543_v20, %s2848_s18  ;;  %v1094_v20 = vadd.f32 %v1082_v25, %v1070_v57 }
 0x113   :  { %v990_v52 = vadd.f32 %v989_v0, %v893_v36  ;;  %v1170_v5 = vmul.f32 %v3699_v35, %v1102_v10  ;;  %v1237_v6 = vmul.f32 %v3709_v26, %v1102_v10  ;;  %v1197_v55 = vmul.f32 %v3681_v11, %v1102_v10 }
 0x114   :  { %v1277_v48 = vmul.f32 %v3723_v54, %v1102_v10  ;;  %v1304_v17 = vmul.f32 %v3767_v44, %v1102_v10  ;;  %v1344_v21 = vmul.f32 %v3798_v60, %v1102_v10 }
 0x115   :  { %v1047_v29 = vadd.f32 %v1046_v23, %v990_v52  ;;  %v1251_v36 = vrot.slane %v1237_v6, 2  ;;  %v1211_v0 = vrot.slane %v1197_v55, 1 }
 0x116   :  { %v1318_v18 = vrot.slane %v1304_v17, 1 }
 0x117   :  { %1587 = vrot.lane.b32.xlu2 %v1579_v14, %s2848_s18  ;;  %1461 = vrot.lane.b32.xlu0 %v1454_v32, %s2847_s2  ;;  %v3992_v7 = vadd.f32 %v1092_v41, %v1047_v29  ;;  %v765_v29 = vadd.f32 %v3865_v3, %v3860_v16 }
 0x118   :  { %v898_v9 = vpop.f32.mrf.mxu1  ;;  %v837_v4 = vpop.f32.mrf.mxu0 }
 0x119   :  { %v993_v59 = vpop.f32.mrf.mxu2  ;;  %v1172_v43 = vmul.f32 %v3699_v35, %v3992_v7  ;;  %v899_v12 = vadd.f32 %v898_v9, %v833_v30  ;;  %v1050_v42 = vpop.f32.mrf.mxu3  ;;  %v4005_v13 = vmul.f32 %v3709_v26, %v3992_v7  ;;  %v4009_v61 = vmul.f32 %v3681_v11, %v3992_v7  ;;  %v1072_v30 = vld [vmem:[%s5017_s1 + $0x38] sm:$0xff] }
 0x11a   :  { %1497 = vrot.lane.b32.xlu1 %v1490_v40, %s2847_s2  ;;  %v1306_v22 = vmul.f32 %v3767_v44, %v3992_v7  ;;  %v4031_v15 = vmul.f32 %v3798_v60, %v3992_v7  ;;  %v838_v37 = vadd.f32 %v837_v4, %v761_v56  ;;  %v1358_v9 = vrot.slane %v1344_v21, 2 }
 0x11b   :  { %v994_v34 = vadd.f32 %v993_v59, %v899_v12  ;;  %v1252_v28 = vrot.slane %v4005_v13, 2  ;;  %v1212_v8 = vrot.slane %v4009_v61, 1  ;;  %v1279_v3 = vmul.f32 %v3723_v54, %v3992_v7  ;;  %v1086_v7 = vld [vmem:[%s5018_s3 + $0x48] sm:$0xff] }
 0x11c   :  { %v1319_v14 = vrot.slane %v1306_v22, 1  ;;  %v1359_v32 = vrot.slane %v4031_v15, 2 }
 0x11d   :  { %v1051_v23 = vadd.f32 %v1050_v42, %v994_v34  ;;  %v1253_v31 = vsel %vm1155_vm0, %v1251_v36, %v1252_v28  ;;  %v1213_v27 = vsel %vm1139_vm1, %v1211_v0, %v1212_v8 }
 0x11e   :  { %v1320_v33 = vsel %vm1139_vm1, %v1318_v18, %v1319_v14  ;;  %v1360_v58 = vsel %vm1155_vm0, %v1358_v9, %v1359_v32 }
 0x11f   :  { %1555 = vrot.lane.b32.xlu2 %v1548_v46, %s2848_s18  ;;  %1183 = vrot.lane.b32.xlu0 %v1172_v43, %s2847_s2  ;;  %v1106_v41 = vadd.f32 %v1094_v20, %v1051_v23  ;;  %v1084_v43 = vld [vmem:[%s5018_s3 + $0x38] sm:$0xff]  ;;  %v1074_v46 = vld [vmem:[%s5017_s1 + $0x48] sm:$0xff]  ;;  %v769_v23 = vadd.f32 %v3895_v62, %v3893_v49 }
 0x120   :  { %v904_v39 = vpop.f32.mrf.mxu1  ;;  %v842_v52 = vpop.f32.mrf.mxu0  ;;  %v1098_v55 = vadd.f32 %v1086_v7, %v1074_v46 }
 0x121   :  { %v997_v19 = vpop.f32.mrf.mxu2  ;;  %v1054_v51 = vpop.f32.mrf.mxu3  ;;  %v843_v24 = vadd.f32 %v842_v52, %v765_v29  ;;  %v905_v40 = vadd.f32 %v904_v39, %v838_v37  ;;  %v1241_v63 = vmul.f32 %v3709_v26, %v1106_v41  ;;  %v1308_v16 = vmul.f32 %v3767_v44, %v1106_v41  ;;  %v1076_v29 = vld [vmem:[%s5017_s1 + $0x58] sm:$0xff] }
 0x122   :  { %1179 = vrot.lane.b32.xlu1 %v1170_v5, %s2847_s2  ;;  %v1201_v12 = vmul.f32 %v3681_v11, %v1106_v41  ;;  %v1096_v39 = vadd.f32 %v1084_v43, %v1072_v30  ;;  %v1348_v22 = vmul.f32 %v3798_v60, %v1106_v41  ;;  %v1088_v41 = vld [vmem:[%s5018_s3 + $0x58] sm:$0xff] }
 0x123   :  { %v998_v10 = vadd.f32 %v997_v19, %v905_v40  ;;  %v1256_v13 = vrot.slane %v1241_v63, 2  ;;  %v1323_v61 = vrot.slane %v1308_v16, 1  ;;  %v1100_v9 = vadd.f32 %v1088_v41, %v1076_v29  ;;  %v1618_v29 = vld [vmem:[%s5019_s5 + $0x58] sm:$0xff] }
 0x124   :  { %v1216_v34 = vrot.slane %v1201_v12, 1  ;;  %v1363_v52 = vrot.slane %v1348_v22, 2 }
 0x125   :  { %v1055_v5 = vadd.f32 %v1054_v51, %v998_v10  ;;  %v1257_v57 = vsel %vm1155_vm0, %v1252_v28, %v1256_v13  ;;  %v1324_v25 = vsel %vm1139_vm1, %v1319_v14, %v1323_v61 }
 0x126   :  { %v1217_v20 = vsel %vm1139_vm1, %v1212_v8, %v1216_v34  ;;  %v1364_v56 = vsel %vm1155_vm0, %v1359_v32, %v1363_v52  ;;  %v1620_v52 = vld [vmem:[%s5019_s5 + $0x68] sm:$0xff] }
 0x127   :  { %1260 = vrot.lane.b32.xlu2 %v1253_v31, %s2847_s2  ;;  %1220 = vrot.lane.b32.xlu0 %v1213_v27, %s2847_s2  ;;  %v1108_v19 = vadd.f32 %v1096_v39, %v1055_v5 }
 0x128   :  { %v910_v53 = vpop.f32.mrf.mxu1  ;;  %v847_v36 = vpop.f32.mrf.mxu0 }
 0x129   :  { %v911_v45 = vadd.f32 %v910_v53, %v843_v24  ;;  %v1001_v59 = vpop.f32.mrf.mxu2  ;;  %v1058_v42 = vpop.f32.mrf.mxu3  ;;  %v848_v28 = vadd.f32 %v847_v36, %v769_v23  ;;  %v1414_v27 = vmul.f32 %v3699_v35, %v1108_v19  ;;  %v1472_v49 = vmul.f32 %v3709_v26, %v1108_v19  ;;  %v1621_v23 = vld [vmem:[%s5019_s5 + $0x70] sm:$0xff] }
 0x12a   :  { %1286 = vrot.lane.b32.xlu1 %v1277_v48, %s2848_s18  ;;  %v1436_v62 = vmul.f32 %v3681_v11, %v1108_v19  ;;  %v1530_v63 = vmul.f32 %v3767_v44, %v1108_v19  ;;  %v1566_v16 = vmul.f32 %v3798_v60, %v1108_v19 }
 0x12b   :  { %v1002_v4 = vadd.f32 %v1001_v59, %v911_v45  ;;  %v1486_v24 = vrot.slane %v1472_v49, 2 }
 0x12c   :  { %v1450_v18 = vrot.slane %v1436_v62, 1  ;;  %v1580_v12 = vrot.slane %v1566_v16, 2 }
 0x12d   :  { %v1059_v6 = vadd.f32 %v1058_v42, %v1002_v4  ;;  %v1544_v4 = vrot.slane %v1530_v63, 1 }
 0x12f   :  { %1327 = vrot.lane.b32.xlu2 %v1320_v33, %s2848_s18  ;;  %1367 = vrot.lane.b32.xlu0 %v1360_v58, %s2848_s18  ;;  %v1110_v0 = vadd.f32 %v1098_v55, %v1059_v6  ;;  %v1508_v58 = vmul.f32 %v3723_v54, %v1108_v19 }
 0x130   :  { %v916_v31 = vpop.f32.mrf.mxu1 }
 0x131   :  { %v1416_v15 = vmul.f32 %v3699_v35, %v1110_v0  ;;  %v917_v51 = vadd.f32 %v916_v31, %v848_v28  ;;  %v1474_v48 = vmul.f32 %v3709_v26, %v1110_v0  ;;  %v1438_v17 = vmul.f32 %v3681_v11, %v1110_v0  ;;  %v1005_v8 = vpop.f32.mrf.mxu2  ;;  %v1062_v37 = vpop.f32.mrf.mxu3 }
 0x132   :  { %1290 = vrot.lane.b32.xlu1 %v1279_v3, %s2848_s18  ;;  %v1532_v40 = vmul.f32 %v3767_v44, %v1110_v0  ;;  %v1568_v33 = vmul.f32 %v3798_v60, %v1110_v0  ;;  %v1510_v61 = vmul.f32 %v3723_v54, %v1110_v0 }
 0x133   :  { %v1006_v35 = vadd.f32 %v1005_v8, %v917_v51  ;;  %v1487_v53 = vrot.slane %v1474_v48, 2  ;;  %v1451_v14 = vrot.slane %v1438_v17, 1  ;;  %v4162_v17 = vand.u32 4294901760, %v1620_v52 }
 0x134   :  { %v1545_v30 = vrot.slane %v1532_v40, 1  ;;  %v1581_v43 = vrot.slane %v1568_v33, 2  ;;  %v1617_v33 = vld [vmem:[%s5019_s5 + $0x50] sm:$0xff] }
 0x135   :  { %v1063_v32 = vadd.f32 %v1062_v37, %v1006_v35  ;;  %v1488_v45 = vsel %vm1155_vm0, %v1486_v24, %v1487_v53  ;;  %v1452_v59 = vsel %vm1139_vm1, %v1450_v18, %v1451_v14  ;;  %v4195_v24 = vand.u32 4294901760, %v1618_v29 }
 0x136   :  { %v1546_v42 = vsel %vm1139_vm1, %v1544_v4, %v1545_v30  ;;  %v1582_v46 = vsel %vm1155_vm0, %v1580_v12, %v1581_v43  ;;  %v4218_v16 = vand.u32 4294901760, %v1617_v33 }
 0x137   :  { %1264 = vrot.lane.b32.xlu2 %v1257_v57, %s2847_s2  ;;  %1331 = vrot.lane.b32.xlu0 %v1324_v25, %s2848_s18  ;;  %v1112_v10 = vadd.f32 %v1100_v9, %v1063_v32 }
 0x138   :  { %v4228_v12 = vsub.f32 %v1617_v33, %v4218_v16 }
 0x139   :  { %v1476_v7 = vmul.f32 %v3709_v26, %v1112_v10  ;;  %v1534_v13 = vmul.f32 %v3767_v44, %v1112_v10  ;;  %v1440_v6 = vmul.f32 %v3681_v11, %v1112_v10  ;;  %v1570_v25 = vmul.f32 %v3798_v60, %v1112_v10  ;;  %v1622_v60 = vld [vmem:[%s5019_s5 + $0x78] sm:$0xff] }
 0x13a   :  { %1224 = vrot.lane.b32.xlu1 %v1217_v20, %s2847_s2  ;;  %v4136_v22 = vand.u32 4294901760, %v1622_v60 }
 0x13b   :  { %v1491_v55 = vrot.slane %v1476_v7, 2  ;;  %v1549_v34 = vrot.slane %v1534_v13, 1  ;;  %v1455_v57 = vrot.slane %v1440_v6, 1  ;;  %v1585_v36 = vrot.slane %v1570_v25, 2  ;;  %v1615_v7 = vld [vmem:[%s5019_s5 + $0x40] sm:$0xff] }
 0x13c   :  { %1875 = vmatpush.msrb.mxu3 %v4136_v22  ;;  %1628 = vmatpush.msrb.mxu0 %v4136_v22  ;;  %v5065_v13 = vand.u32 4294901760, %v4228_v12  ;;  %v4245_v6 = vand.u32 4294901760, %v1615_v7 }
 0x13d   :  { %v1492_v26 = vsel %vm1155_vm0, %v1487_v53, %v1491_v55  ;;  %v1550_v44 = vsel %vm1139_vm1, %v1545_v30, %v1549_v34  ;;  %v1456_v11 = vsel %vm1139_vm1, %v1451_v14, %v1455_v57  ;;  %v1586_v20 = vsel %vm1155_vm0, %v1581_v43, %v1585_v36  ;;  %v1616_v43 = vld [vmem:[%s5019_s5 + $0x48] sm:$0xff]  ;;  %v1614_v34 = vld [vmem:[%s5019_s5 + $0x38] sm:$0xff] }
 0x13e   :  { %v4264_v36 = vand.u32 4294901760, %v1614_v34 }
 0x13f   :  { %1423 = vrot.lane.b32.xlu2 %v1414_v27, %s2847_s2  ;;  %1427 = vrot.lane.b32.xlu0 %v1416_v15, %s2847_s2  ;;  %v4146_v27 = vsub.f32 %v1622_v60, %v4136_v22  ;;  %v4148_v15 = vand.u32 4294901760, %v1621_v23 }
 0x141   :  { %v4083_v21 = vpop.permute.xlu2 %1181  ;;  %v5071_v51 = vand.u32 4294901760, %v4146_v27  ;;  %v4159_v48 = vsub.f32 %v1621_v23, %v4148_v15  ;;  %1807 = vmatpush.msrb.mxu2 %v4146_v27  ;;  %1877 = vmatpush.msrb.mxu3 %v4148_v15 }
 0x142   :  { %1371 = vrot.lane.b32.xlu1 %v1364_v56, %s2848_s18  ;;  %1630 = vmatpush.msrb.mxu0 %v4148_v15  ;;  %v4176_v56 = vsub.f32 %v1620_v52, %v4162_v17  ;;  %v4272_v52 = vsub.f32 %v1614_v34, %v4264_v36 }
 0x143   :  { %v1695_v49 = vsub.f32 %v4146_v27, %v5071_v51  ;;  %v5070_v62 = vand.u32 4294901760, %v4159_v48  ;;  %1810 = vmatpush.msrb.mxu2 %v4159_v48  ;;  %1879 = vmatpush.msrb.mxu3 %v4162_v17 }
 0x144   :  { %1632 = vmatpush.msrb.mxu0 %v4162_v17  ;;  %v5069_v14 = vand.u32 4294901760, %v4176_v56 }
 0x145   :  { %v1696_v41 = vand.u32 4294901760, %v1695_v49  ;;  %v1701_v53 = vsub.f32 %v4159_v48, %v5070_v62  ;;  %1813 = vmatpush.msrb.mxu2 %v4176_v56  ;;  %v1613_v49 = vld [vmem:[%s5019_s5 + $0x30] sm:$0xff] }
 0x146   :  { %v1707_v32 = vsub.f32 %v4176_v56, %v5069_v14 }
 0x147   :  { %1495 = vrot.lane.b32.xlu2 %v1488_v45, %s2847_s2  ;;  %1459 = vrot.lane.b32.xlu0 %v1452_v59, %s2847_s2  ;;  %v1702_v40 = vand.u32 4294901760, %v1701_v53  ;;  %v4208_v59 = vsub.f32 %v1618_v29, %v4195_v24  ;;  %v5061_v53 = vand.u32 4294901760, %v4272_v52 }
 0x148   :  { %1697 = vmatpush.msrb.mxu1 %v1696_v41 }
 0x149   :  { %v4102_v3 = vpop.permute.xlu2 %1218  ;;  %v5066_v30 = vand.u32 4294901760, %v4208_v59 }
 0x14a   :  { %1517 = vrot.lane.b32.xlu1 %v1508_v58, %s2848_s18  ;;  %1703 = vmatpush.msrb.mxu1 %v1702_v40  ;;  %v1708_v58 = vand.u32 4294901760, %v1707_v32  ;;  %v4286_v40 = vand.u32 4294901760, %v1613_v49  ;;  %v1612_v32 = vld [vmem:[%s5019_s5 + $0x28] sm:$0xff] }
 0x14c   :  { %1709 = vmatpush.msrb.mxu1 %v1708_v58  ;;  %v1743_v58 = vsub.f32 %v4272_v52, %v5061_v53 }
 0x14f   :  { %1553 = vrot.lane.b32.xlu2 %v1546_v42, %s2848_s18  ;;  %1589 = vrot.lane.b32.xlu0 %v1582_v46, %s2848_s18  ;;  %v4230_v42 = vand.u32 4294901760, %v1616_v43  ;;  %v1719_v46 = vsub.f32 %v4208_v59, %v5066_v30 }
 0x151   :  { %v4112_v39 = vpop.permute.xlu2 %1365  ;;  %v4114_v5 = vpop.permute.xlu0 %1177  ;;  %v1720_v55 = vand.u32 4294901760, %v1719_v46 }
 0x152   :  { %1521 = vrot.lane.b32.xlu1 %v1510_v61, %s2848_s18  ;;  %v4242_v61 = vsub.f32 %v1616_v43, %v4230_v42  ;;  %v4299_v43 = vand.u32 4294901760, %v1612_v32 }
 0x154   :  { %v5063_v25 = vand.u32 4294901760, %v4242_v61 }
 0x156   :  { %v1731_v60 = vsub.f32 %v4242_v61, %v5063_v25  ;;  %v1608_v25 = vld [vmem:[%s5019_s5 + $0x8] sm:$0xff] }
 0x157   :  { %1499 = vrot.lane.b32.xlu2 %v1492_v26, %s2847_s2  ;;  %1557 = vrot.lane.b32.xlu0 %v1550_v44, %s2848_s18  ;;  %v1725_v44 = vsub.f32 %v4228_v12, %v5065_v13  ;;  %v4359_v13 = vand.u32 4294901760, %v1608_v25 }
 0x158   :  { %v1732_v29 = vand.u32 4294901760, %v1731_v60  ;;  %v1610_v60 = vld [vmem:[%s5019_s5 + $0x18] sm:$0xff] }
 0x159   :  { %v4123_v54 = vpop.permute.xlu2 %1329  ;;  %v4125_v19 = vpop.permute.xlu0 %1284 }
 0x15a   :  { %1463 = vrot.lane.b32.xlu1 %v1456_v11, %s2847_s2  ;;  %v4261_v11 = vsub.f32 %v1615_v7, %v4245_v6 }
 0x15c   :  { %v4129_v0 = vpop.permute.xlu1 %1258  ;;  %v5062_v23 = vand.u32 4294901760, %v4261_v11 }
 0x15e   :  { %v1737_v41 = vsub.f32 %v4261_v11, %v5062_v23 }
 0x15f   :  { %1593 = vrot.lane.b32.xlu2 %v1586_v20, %s2848_s18  ;;  %v1726_v20 = vand.u32 4294901760, %v1725_v44  ;;  %v4312_v44 = vsub.f32 %v1612_v32, %v4299_v43  ;;  %v4330_v32 = vand.u32 4294901760, %v1610_v60 }
 0x160   :  { %v1738_v33 = vand.u32 4294901760, %v1737_v41 }
 0x161   :  { %v4141_v31 = vpop.permute.xlu2 %1425  ;;  %v4143_v28 = vpop.permute.xlu0 %1288  ;;  %v4344_v53 = vsub.f32 %v1610_v60, %v4330_v32 }
 0x162   :  { %5151 = vst [vmem:[#allocation7_spill] sm:$0xff] %v4141_v31  ;;  %1591 = vrot.lane.b32.xlu1 %v3948_v38, %s2848_s18  ;;  %v1619_v38 = vld [vmem:[%s5019_s5 + $0x60] sm:$0xff] }
 0x163   :  { %v4179_v35 = vand.u32 4294901760, %v1619_v38  ;;  %v5072_v60 = vand.u32 4294901760, %v4344_v53 }
 0x164   :  { %v4165_v8 = vpop.permute.xlu1 %1325 }
 0x165   :  { %v4191_v37 = vsub.f32 %v1619_v38, %v4179_v35  ;;  %1881 = vmatpush.msrb.mxu3 %v4179_v35  ;;  %1634 = vmatpush.msrb.mxu0 %v4179_v35  ;;  %v1767_v14 = vsub.f32 %v4344_v53, %v5072_v60 }
 0x167   :  { %v5067_v45 = vand.u32 4294901760, %v4191_v37  ;;  %1816 = vmatpush.msrb.mxu2 %v4191_v37  ;;  %1883 = vmatpush.msrb.mxu3 %v4195_v24 }
 0x168   :  { %1636 = vmatpush.msrb.mxu0 %v4195_v24 }
 0x169   :  { %v4198_v18 = vpop.permute.xlu2 %1457  ;;  %v4200_v9 = vpop.permute.xlu0 %1222  ;;  %v1713_v63 = vsub.f32 %v4191_v37, %v5067_v45  ;;  %1819 = vmatpush.msrb.mxu2 %v4208_v59  ;;  %1885 = vmatpush.msrb.mxu3 %v4218_v16  ;;  %v1607_v45 = vld [vmem:[%s5019_s5] sm:$0xff] }
 0x16a   :  { %1638 = vmatpush.msrb.mxu0 %v4218_v16  ;;  %v4379_v62 = vand.u32 4294901760, %v1607_v45 }
 0x16b   :  { %v1714_v4 = vand.u32 4294901760, %v1713_v63  ;;  %1822 = vmatpush.msrb.mxu2 %v4228_v12  ;;  %1887 = vmatpush.msrb.mxu3 %v4230_v42  ;;  %v4297_v63 = vsub.f32 %v1613_v49, %v4286_v40 }
 0x16c   :  { %v4220_v10 = vpop.permute.xlu1 %1262  ;;  %1640 = vmatpush.msrb.mxu0 %v4230_v42 }
 0x16d   :  { %1715 = vmatpush.msrb.mxu1 %v1714_v4  ;;  %1825 = vmatpush.msrb.mxu2 %v4242_v61  ;;  %v1611_v4 = vld [vmem:[%s5019_s5 + $0x20] sm:$0xff]  ;;  %v5060_v34 = vand.u32 4294901760, %v4297_v63 }
 0x16e   :  { %1889 = vmatpush.msrb.mxu3 %v4245_v6  ;;  %1642 = vmatpush.msrb.mxu0 %v4245_v6 }
 0x16f   :  { %1721 = vmatpush.msrb.mxu1 %v1720_v55  ;;  %1828 = vmatpush.msrb.mxu2 %v4261_v11  ;;  %v1744_v55 = vand.u32 4294901760, %v1743_v58  ;;  %v1749_v49 = vsub.f32 %v4297_v63, %v5060_v34  ;;  %v1609_v58 = vld [vmem:[%s5019_s5 + $0x10] sm:$0xff] }
 0x170   :  { %1891 = vmatpush.msrb.mxu3 %v4264_v36  ;;  %1644 = vmatpush.msrb.mxu0 %v4264_v36  ;;  %v4347_v23 = vand.u32 4294901760, %v1609_v58 }
 0x171   :  { %v4252_v57 = vpop.permute.xlu2 %1587  ;;  %v4254_v26 = vpop.permute.xlu0 %1369  ;;  %1727 = vmatpush.msrb.mxu1 %v1726_v20  ;;  %1831 = vmatpush.msrb.mxu2 %v4272_v52  ;;  %v4315_v20 = vand.u32 4294901760, %v1611_v4 }
 0x172   :  { %5152 = vst [vmem:[#allocation13_spill] sm:$0xff] %v4252_v57  ;;  %1893 = vmatpush.msrb.mxu3 %v4286_v40  ;;  %1646 = vmatpush.msrb.mxu0 %v4286_v40  ;;  %v4362_v30 = vsub.f32 %v1609_v58, %v4347_v23  ;;  %v4377_v58 = vsub.f32 %v1608_v25, %v4359_v13 }
 0x173   :  { %1733 = vmatpush.msrb.mxu1 %v1732_v29  ;;  %1834 = vmatpush.msrb.mxu2 %v4297_v63  ;;  %v5064_v29 = vand.u32 4294901760, %v4312_v44  ;;  %v4327_v41 = vsub.f32 %v1611_v4, %v4315_v20 }
 0x174   :  { %v4276_v38 = vpop.permute.xlu1 %1421  ;;  %1895 = vmatpush.msrb.mxu3 %v4299_v43  ;;  %1648 = vmatpush.msrb.mxu0 %v4299_v43  ;;  %v5073_v51 = vand.u32 4294901760, %v4362_v30 }
 0x175   :  { %1739 = vmatpush.msrb.mxu1 %v1738_v33  ;;  %1837 = vmatpush.msrb.mxu2 %v4312_v44  ;;  %v1755_v4 = vsub.f32 %v4312_v44, %v5064_v29  ;;  %v5068_v34 = vand.u32 4294901760, %v4327_v41 }
 0x176   :  { %1897 = vmatpush.msrb.mxu3 %v4315_v20  ;;  %1650 = vmatpush.msrb.mxu0 %v4315_v20  ;;  %v1773_v25 = vsub.f32 %v4362_v30, %v5073_v51 }
 0x177   :  { %1745 = vmatpush.msrb.mxu1 %v1744_v55  ;;  %v1750_v55 = vand.u32 4294901760, %v1749_v49  ;;  %1840 = vmatpush.msrb.mxu2 %v4327_v41  ;;  %v1756_v49 = vand.u32 4294901760, %v1755_v4  ;;  %v1761_v29 = vsub.f32 %v4327_v41, %v5068_v34 }
 0x178   :  { %1899 = vmatpush.msrb.mxu3 %v4330_v32  ;;  %1652 = vmatpush.msrb.mxu0 %v4330_v32 }
 0x179   :  { %v4306_v46 = vpop.permute.xlu0 %1515  ;;  %v4308_v7 = vpop.permute.xlu2 %1555  ;;  %1751 = vmatpush.msrb.mxu1 %v1750_v55  ;;  %1843 = vmatpush.msrb.mxu2 %v4344_v53  ;;  %v1762_v34 = vand.u32 4294901760, %v1761_v29  ;;  %v4386_v29 = vsub.f32 %v1607_v45, %v4379_v62 }
 0x17a   :  { %5153 = vst [vmem:[#allocation12_spill] sm:$0xff] %v4308_v7  ;;  %1901 = vmatpush.msrb.mxu3 %v4347_v23  ;;  %1654 = vmatpush.msrb.mxu0 %v4347_v23  ;;  %v1768_v7 = vand.u32 4294901760, %v1767_v14 }
 0x17b   :  { %1757 = vmatpush.msrb.mxu1 %v1756_v49  ;;  %1846 = vmatpush.msrb.mxu2 %v4362_v30  ;;  %v5074_v49 = vand.u32 4294901760, %v4377_v58  ;;  %v1784_v45 = vand.u32 4294901760, %v4386_v29 }
 0x17c   :  { %v4332_v33 = vpop.permute.xlu1 %1493  ;;  %1903 = vmatpush.msrb.mxu3 %v4359_v13  ;;  %1656 = vmatpush.msrb.mxu0 %v4359_v13 }
 0x17d   :  { %1763 = vmatpush.msrb.mxu1 %v1762_v34  ;;  %1849 = vmatpush.msrb.mxu2 %v4377_v58  ;;  %v1779_v14 = vsub.f32 %v4377_v58, %v5074_v49  ;;  %v1774_v34 = vand.u32 4294901760, %v1773_v25  ;;  %v1785_v50 = vsub.f32 %v4386_v29, %v1784_v45  ;;  %v5158_v25 = vand.u32 4294901760, %v4176_v56 }
 0x17e   :  { %1905 = vmatpush.msrb.mxu3 %v4379_v62  ;;  %1658 = vmatpush.msrb.mxu0 %v4379_v62  ;;  %v5162_v56 = vand.u32 4294901760, %v4242_v61 }
 0x17f   :  { %1769 = vmatpush.msrb.mxu1 %v1768_v7  ;;  %1852 = vmatpush.msrb.mxu2 %v4386_v29  ;;  %v1780_v51 = vand.u32 4294901760, %v1779_v14  ;;  %v5157_v7 = vand.u32 4294901760, %v4159_v48  ;;  %v1786_v57 = vand.u32 4294901760, %v1785_v50  ;;  %v5161_v48 = vand.u32 4294901760, %v4228_v12 }
 0x180   :  { %v5164_v12 = vand.u32 4294901760, %v4272_v52  ;;  %v5167_v52 = vand.u32 4294901760, %v4327_v41 }
 0x181   :  { %v4369_v55 = vpop.permute.xlu0 %1519  ;;  %v4371_v4 = vpop.permute.xlu2 %1260  ;;  %1775 = vmatpush.msrb.mxu1 %v1774_v34 }
 0x182   :  { %5154 = vst [vmem:[#allocation15_spill] sm:$0xff] %v4369_v55  ;;  %v5156_v55 = vand.u32 4294901760, %v4146_v27  ;;  %v5159_v27 = vand.u32 4294901760, %v4191_v37  ;;  %v5163_v37 = vand.u32 4294901760, %v4261_v11 }
 0x183   :  { %1781 = vmatpush.msrb.mxu1 %v1780_v51 }
 0x184   :  { %v4389_v60 = vpop.permute.xlu1 %1551  ;;  %1934 = vmatpush.msra.mxu0 %v5156_v55  ;;  %v5160_v55 = vand.u32 4294901760, %v4208_v59 }
 0x185   :  { %5155 = vst [vmem:[#allocation3_spill] sm:$0xff] %v4389_v60  ;;  %1787 = vmatpush.msrb.mxu1 %v1786_v57 }
 0x186   :  { %1938 = vmatpush.msra.mxu0 %v5157_v7 }
 0x187   :  { %2013 = vmatpush.msra.mxu1 %v4136_v22 }
 0x188   :  { %1942 = vmatpush.msra.mxu0 %v5158_v25 }
 0x189   :  { %v1328_v49 = vpop.permute.xlu2 %1327  ;;  %v4409_v31 = vpop.permute.xlu0 %1461  ;;  %2015 = vmatpush.msra.mxu1 %v4148_v15 }
 0x18a   :  { %1946 = vmatpush.msra.mxu0 %v5159_v27 }
 0x18b   :  { %2017 = vmatpush.msra.mxu1 %v4162_v17  ;;  %v5165_v17 = vand.u32 4294901760, %v4297_v63 }
 0x18c   :  { %v4413_v60 = vpop.permute.xlu1 %1497  ;;  %1950 = vmatpush.msra.mxu0 %v5160_v55 }
 0x18d   :  { %2019 = vmatpush.msra.mxu1 %v4179_v35 }
 0x18e   :  { %1954 = vmatpush.msra.mxu0 %v5161_v48 }
 0x18f   :  { %2021 = vmatpush.msra.mxu1 %v4195_v24 }
 0x190   :  { %1958 = vmatpush.msra.mxu0 %v5162_v56 }
 0x191   :  { %v4423_v50 = vpop.permute.xlu2 %1264  ;;  %v1184_v51 = vpop.permute.xlu0 %1183  ;;  %2023 = vmatpush.msra.mxu1 %v4218_v16  ;;  %v1266_v16 = vsel %vm1185_vm2, %v4129_v0, %v4371_v4  ;;  %v1333_v0 = vsel %vm1292_vm3, %v4165_v8, %v1328_v49 }
 0x192   :  { %1962 = vmatpush.msra.mxu0 %v5163_v37 }
 0x193   :  { %2025 = vmatpush.msra.mxu1 %v4230_v42 }
 0x194   :  { %v1180_v22 = vpop.permute.xlu1 %1179  ;;  %1966 = vmatpush.msra.mxu0 %v5164_v12  ;;  %v5171_v12 = vld [vmem:[#allocation3_spill] sm:$0xff] }
 0x195   :  { %v1186_v15 = vsel %vm1185_vm2, %v4114_v5, %v1180_v22  ;;  %2027 = vmatpush.msra.mxu1 %v4245_v6  ;;  %v5169_v6 = vand.u32 4294901760, %v4362_v30 }
 0x196   :  { %v1190_v59 = vadd.f32 %v1186_v15, %v3812_v47  ;;  %1970 = vmatpush.msra.mxu0 %v5165_v17  ;;  %v5166_v47 = vand.u32 4294901760, %v4312_v44 }
 0x197   :  { %2029 = vmatpush.msra.mxu1 %v4264_v36  ;;  %v5170_v36 = vand.u32 4294901760, %v4377_v58 }
 0x198   :  { %1974 = vmatpush.msra.mxu0 %v5166_v47 }
 0x199   :  { %v1424_v35 = vpop.permute.xlu2 %1423  ;;  %v1221_v61 = vpop.permute.xlu0 %1220  ;;  %2031 = vmatpush.msra.mxu1 %v4286_v40 }
 0x19a   :  { %v1429_v57 = vsel %vm1185_vm2, %v4276_v38, %v1424_v35  ;;  %v1226_v5 = vsel %vm1185_vm2, %v4102_v3, %v1221_v61  ;;  %1978 = vmatpush.msra.mxu0 %v5167_v52 }
 0x19b   :  { %v1433_v24 = vadd.f32 %v1429_v57, %v3934_v1  ;;  %v1230_v11 = vadd.f32 %v1226_v5, %v1190_v59  ;;  %v5168_v1 = vand.u32 4294901760, %v4344_v53  ;;  %2033 = vmatpush.msra.mxu1 %v4299_v43  ;;  %v5172_v57 = vld [vmem:[#allocation13_spill] sm:$0xff] }
 0x19c   :  { %v1287_v42 = vpop.permute.xlu1 %1286 }
 0x19d   :  { %v1270_v38 = vadd.f32 %v1266_v16, %v1230_v11  ;;  %v1293_v3 = vsel %vm1292_vm3, %v4125_v19, %v1287_v42  ;;  %1982 = vmatpush.msra.mxu0 %v5168_v1  ;;  %2035 = vmatpush.msra.mxu1 %v4315_v20  ;;  %v5173_v16 = vld [vmem:[#allocation7_spill] sm:$0xff] }
 0x19f   :  { %v1297_v63 = vadd.f32 %v1293_v3, %v1270_v38  ;;  %1986 = vmatpush.msra.mxu0 %v5169_v6  ;;  %2037 = vmatpush.msra.mxu1 %v4330_v32  ;;  %v5174_v3 = vld [vmem:[#allocation5_spill] sm:$0xff] }
 0x1a1   :  { %v1337_v44 = vadd.f32 %v1333_v0, %v1297_v63  ;;  %v1368_v41 = vpop.permute.xlu0 %1367  ;;  %1990 = vmatpush.msra.mxu0 %v5170_v36  ;;  %2039 = vmatpush.msra.mxu1 %v4347_v23 }
 0x1a2   :  { %v1373_v19 = vsel %vm1292_vm3, %v4112_v39, %v1368_v41  ;;  %v1187_v39 = vsel %vm1185_vm2, %v4083_v21, %v1184_v51  ;;  %v1267_v21 = vsel %vm1185_vm2, %v4220_v10, %v4423_v50 }
 0x1a3   :  { %v1377_v53 = vadd.f32 %v1373_v19, %v1337_v44  ;;  %1994 = vmatpush.msra.mxu0 %v1784_v45  ;;  %2041 = vmatpush.msra.mxu1 %v4359_v13  ;;  %v1191_v58 = vadd.f32 %v1187_v39, %v3853_v2  ;;  %v1496_v2 = vpop.permute.xlu2 %1495  ;;  %v5176_v39 = vld [vmem:[#allocation12_spill] sm:$0xff] }
 0x1a4   :  { %v1291_v40 = vpop.permute.xlu1 %1290  ;;  %v1501_v51 = vsel %vm1185_vm2, %v4332_v33, %v1496_v2 }
 0x1a5   :  { %v4472_v8 = vand.u32 4294901760, %v1377_v53  ;;  %2043 = vmatpush.msra.mxu1 %v4379_v62  ;;  %v1294_v13 = vsel %vm1292_vm3, %v4143_v28, %v1291_v40 }
 0x1a7   :  { %v1660_v30 = vsub.f32 %v1377_v53, %v4472_v8  ;;  %1789 = vmatmul.f32.vlgmr.msrb.gmra.mxu1 %v4472_v8  ;;  %v5175_v53 = vld [vmem:[#allocation15_spill] sm:$0xff] }
 0x1a9   :  { %1855 = vmatmul.f32.vlgmr.msrb.gmra.mxu2 %v1660_v30  ;;  %v1332_v43 = vpop.permute.xlu0 %1331  ;;  %v1661_v20 = vand.u32 4294901760, %v1660_v30 }
 0x1aa   :  { %v1334_v62 = vsel %vm1292_vm3, %v4123_v54, %v1332_v43 }
 0x1ab   :  { %1909 = vmatmul.f32.vlgmr.msrb.gmra.mxu3 %v1661_v20  ;;  %v1662_v4 = vsub.f32 %v1660_v30, %v1661_v20  ;;  %v1554_v22 = vpop.permute.xlu2 %1553 }
 0x1ac   :  { %v1225_v49 = vpop.permute.xlu1 %1224 }
 0x1ad   :  { %v1227_v32 = vsel %vm1185_vm2, %v4200_v9, %v1225_v49  ;;  %v1663_v29 = vand.u32 4294901760, %v1662_v4 }
 0x1ae   :  { %v1231_v23 = vadd.f32 %v1227_v32, %v1191_v58 }
 0x1af   :  { %1664 = vmatmul.f32.vlgmr.msrb.gmra.mxu0 %v1663_v29 }
 0x1b0   :  { %v1271_v14 = vadd.f32 %v1267_v21, %v1231_v23 }
 0x1b1   :  { %v1428_v45 = vpop.permute.xlu0 %1427 }
 0x1b2   :  { %v1298_v34 = vadd.f32 %v1294_v13, %v1271_v14  ;;  %v2076_v14 = vld [vmem:[%s5021_s9 + $0x78] sm:$0xff] }
 0x1b3   :  { %v1500_v52 = vpop.permute.xlu2 %1499  ;;  %v4521_v13 = vand.u32 4294901760, %v2076_v14 }
 0x1b4   :  { %v1372_v7 = vpop.permute.xlu1 %1371  ;;  %v1338_v25 = vadd.f32 %v1334_v62, %v1298_v34  ;;  %v1502_v41 = vsel %vm1185_vm2, %v4413_v60, %v1500_v52  ;;  %v2075_v34 = vld [vmem:[%s5021_s9 + $0x70] sm:$0xff]  ;;  %v2074_v62 = vld [vmem:[%s5021_s9 + $0x68] sm:$0xff] }
 0x1b5   :  { %v1374_v9 = vsel %vm1292_vm3, %v4254_v26, %v1372_v7  ;;  %2087 = vmatpush.msra.mxu2 %v4521_v13  ;;  %2283 = vmatpush.msrb.mxu1 %v4521_v13 }
 0x1b6   :  { %v1378_v27 = vadd.f32 %v1374_v9, %v1338_v25  ;;  %v4543_v25 = vand.u32 4294901760, %v2074_v62 }
 0x1b8   :  { %v1667_v55 = vand.u32 4294901760, %v1378_v27 }
 0x1b9   :  { %v1460_v48 = vpop.permute.xlu0 %1459 }
 0x1ba   :  { %v1465_v10 = vsel %vm1185_vm2, %v4198_v18, %v1460_v48  ;;  %1793 = vmatmul.f32.gmra.mxu1 %v1667_v55  ;;  %v1668_v50 = vsub.f32 %v1378_v27, %v1667_v55  ;;  %v1559_v18 = vsel %vm1292_vm3, %v5171_v12, %v1554_v22  ;;  %v2073_v27 = vld [vmem:[%s5021_s9 + $0x60] sm:$0xff]  ;;  %v4556_v48 = vsub.f32 %v2074_v62, %v4543_v25  ;;  %v2064_v62 = vld [vmem:[%s5021_s9 + $0x18] sm:$0xff] }
 0x1bb   :  { %v1469_v28 = vadd.f32 %v1465_v10, %v1433_v24  ;;  %v1594_v20 = vpop.permute.xlu2 %1593  ;;  %v4558_v10 = vand.u32 4294901760, %v2073_v27 }
 0x1bc   :  { %v1518_v56 = vpop.permute.xlu1 %1517  ;;  %1860 = vmatmul.f32.gmra.mxu2 %v1668_v50  ;;  %v1669_v54 = vand.u32 4294901760, %v1668_v50 }
 0x1bd   :  { %v1505_v37 = vadd.f32 %v1501_v51, %v1469_v28  ;;  %v1523_v26 = vsel %vm1292_vm3, %v4306_v46, %v1518_v56  ;;  %v1430_v46 = vsel %vm1185_vm2, %v5173_v16, %v1428_v45  ;;  %v4524_v45 = vsub.f32 %v2076_v14, %v4521_v13  ;;  %v2072_v28 = vld [vmem:[%s5021_s9 + $0x58] sm:$0xff] }
 0x1be   :  { %1915 = vmatmul.f32.gmra.mxu3 %v1669_v54  ;;  %v1670_v15 = vsub.f32 %v1668_v50, %v1669_v54  ;;  %v1434_v1 = vadd.f32 %v1430_v46, %v5174_v3  ;;  %v4573_v54 = vand.u32 4294901760, %v4556_v48  ;;  %v4576_v22 = vsub.f32 %v2073_v27, %v4558_v10  ;;  %v2068_v3 = vld [vmem:[%s5021_s9 + $0x38] sm:$0xff] }
 0x1bf   :  { %v1527_v59 = vadd.f32 %v1523_v26, %v1505_v37  ;;  %v4534_v2 = vand.u32 4294901760, %v4524_v45  ;;  %2230 = vmatpush.msrb.mxu0 %v4524_v45  ;;  %v4578_v37 = vand.u32 4294901760, %v2072_v28  ;;  %v2071_v26 = vld [vmem:[%s5021_s9 + $0x50] sm:$0xff] }
 0x1c0   :  { %v1671_v17 = vand.u32 4294901760, %v1670_v15  ;;  %v4592_v12 = vand.u32 4294901760, %v4576_v22 }
 0x1c1   :  { %v1563_v35 = vadd.f32 %v1559_v18, %v1527_v59  ;;  %v1590_v61 = vpop.permute.xlu0 %1589  ;;  %v2130_v9 = vsub.f32 %v4524_v45, %v4534_v2  ;;  %v2142_v59 = vsub.f32 %v4556_v48, %v4573_v54  ;;  %v4595_v18 = vsub.f32 %v2072_v28, %v4578_v37 }
 0x1c2   :  { %v1595_v33 = vsel %vm1292_vm3, %v5172_v57, %v1590_v61  ;;  %1672 = vmatmul.f32.gmra.mxu0 %v1671_v17  ;;  %v4599_v17 = vand.u32 4294901760, %v2071_v26  ;;  %v2148_v57 = vsub.f32 %v4576_v22, %v4592_v12 }
 0x1c3   :  { %v1599_v5 = vadd.f32 %v1595_v33, %v1563_v35  ;;  %v4562_v50 = vand.u32 4294901760, %v2130_v9  ;;  %v2070_v35 = vld [vmem:[%s5021_s9 + $0x48] sm:$0xff]  ;;  %v4606_v61 = vand.u32 4294901760, %v2142_v59  ;;  %v4611_v33 = vand.u32 4294901760, %v4595_v18 }
 0x1c4   :  { %v1522_v47 = vpop.permute.xlu1 %1521  ;;  %v4627_v16 = vand.u32 4294901760, %v2148_v57 }
 0x1c5   :  { %v1675_v24 = vand.u32 4294901760, %v1599_v5  ;;  %v1524_v40 = vsel %vm1292_vm3, %v5175_v53, %v1522_v47  ;;  %2132 = vmatpush.msra.mxu3 %v4562_v50  ;;  %v4617_v47 = vsub.f32 %v2071_v26, %v4599_v17  ;;  %v2154_v46 = vsub.f32 %v4595_v18, %v4611_v33 }
 0x1c7   :  { %1797 = vmatmul.f32.gmra.mxu1 %v1675_v24  ;;  %v1676_v11 = vsub.f32 %v1599_v5, %v1675_v24  ;;  %v4613_v5 = vand.u32 4294901760, %v2070_v35  ;;  %5177 = vst [vmem:[#allocation6_spill] sm:$0xff] %v4617_v47 }
 0x1c9   :  { %1865 = vmatmul.f32.gmra.mxu2 %v1676_v11  ;;  %v1677_v42 = vand.u32 4294901760, %v1676_v11  ;;  %v1558_v19 = vpop.permute.xlu0 %1557 }
 0x1ca   :  { %v1560_v43 = vsel %vm1292_vm3, %v5176_v39, %v1558_v19  ;;  %v2067_v19 = vld [vmem:[%s5021_s9 + $0x30] sm:$0xff] }
 0x1cb   :  { %1921 = vmatmul.f32.gmra.mxu3 %v1677_v42  ;;  %v1678_v38 = vsub.f32 %v1676_v11, %v1677_v42  ;;  %v4632_v42 = vsub.f32 %v2070_v35, %v4613_v5  ;;  %v2063_v35 = vld [vmem:[%s5021_s9 + $0x10] sm:$0xff] }
 0x1cc   :  { %v1464_v63 = vpop.permute.xlu1 %1463 }
 0x1cd   :  { %v1466_v0 = vsel %vm1185_vm2, %v4409_v31, %v1464_v63  ;;  %v1679_v6 = vand.u32 4294901760, %v1678_v38  ;;  %5178 = vst [vmem:[#allocation4_spill] sm:$0xff] %v4632_v42  ;;  %v4637_v38 = vand.u32 4294901760, %v4617_v47  ;;  %v4647_v63 = vand.u32 4294901760, %v2154_v46 }
 0x1ce   :  { %v1470_v44 = vadd.f32 %v1466_v0, %v1434_v1  ;;  %v4650_v0 = vand.u32 4294901760, %v4632_v42  ;;  %v4750_v46 = vand.u32 4294901760, %v2063_v35 }
 0x1cf   :  { %1680 = vmatmul.f32.gmra.mxu0 %v1679_v6 }
 0x1d0   :  { %v1506_v36 = vadd.f32 %v1502_v41, %v1470_v44  ;;  %5179 = vst [vmem:[#allocation9_spill] sm:$0xff] %v4650_v0  ;;  %v4655_v44 = vand.u32 4294901760, %v2068_v3  ;;  %v2160_v41 = vsub.f32 %v4617_v47, %v4637_v38 }
 0x1d2   :  { %v1528_v30 = vadd.f32 %v1524_v40, %v1506_v36  ;;  %v2166_v36 = vsub.f32 %v4632_v42, %v4650_v0  ;;  %v4672_v40 = vsub.f32 %v2068_v3, %v4655_v44  ;;  %v4677_v39 = vand.u32 4294901760, %v2160_v41 }
 0x1d4   :  { %v1592_v4 = vpop.permute.xlu1 %1591  ;;  %v1564_v58 = vadd.f32 %v1560_v43, %v1528_v30  ;;  %5182 = vst [vmem:[#allocation10_spill] sm:$0xff] %v4672_v40  ;;  %v4674_v30 = vand.u32 4294901760, %v2067_v19  ;;  %v2066_v43 = vld [vmem:[%s5021_s9 + $0x28] sm:$0xff] }
 0x1d5   :  { %v1596_v31 = vsel %vm1292_vm3, %v1592_v4, %v1594_v20  ;;  %v4684_v20 = vand.u32 4294901760, %v2166_v36 }
 0x1d6   :  { %v1600_v49 = vadd.f32 %v1596_v31, %v1564_v58  ;;  %v4689_v58 = vand.u32 4294901760, %v4672_v40  ;;  %v4694_v31 = vsub.f32 %v2067_v19, %v4674_v30  ;;  %v2062_v19 = vld [vmem:[%s5021_s9 + $0x8] sm:$0xff] }
 0x1d8   :  { %v1683_v32 = vand.u32 4294901760, %v1600_v49  ;;  %5183 = vst [vmem:[#allocation14_spill] sm:$0xff] %v4694_v31  ;;  %v4714_v14 = vand.u32 4294901760, %v4694_v31 }
 0x1da   :  { %1801 = vmatmul.f32.gmra.mxu1 %v1683_v32  ;;  %v1684_v29 = vsub.f32 %v1600_v49, %v1683_v32  ;;  %v4696_v49 = vand.u32 4294901760, %v2066_v43  ;;  %v2184_v26 = vsub.f32 %v4694_v31, %v4714_v14 }
 0x1dc   :  { %1870 = vmatmul.f32.gmra.mxu2 %v1684_v29  ;;  %v1685_v60 = vand.u32 4294901760, %v1684_v29  ;;  %v4755_v3 = vand.u32 4294901760, %v2184_v26 }
 0x1de   :  { %1927 = vmatmul.f32.gmra.mxu3 %v1685_v60  ;;  %v1686_v23 = vsub.f32 %v1684_v29, %v1685_v60 }
 0x1e0   :  { %v1687_v21 = vand.u32 4294901760, %v1686_v23  ;;  %v2178_v23 = vsub.f32 %v4672_v40, %v4689_v58 }
 0x1e2   :  { %1688 = vmatmul.f32.gmra.mxu0 %v1687_v21  ;;  %2045 = vmatmul.f32.vlgmr.msra.gmra.mxu1 %v4472_v8  ;;  %v4725_v27 = vand.u32 4294901760, %v2178_v23 }
 0x1ea   :  { %1996 = vmatmul.f32.vlgmr.msra.gmra.mxu0 %v4472_v8  ;;  %2049 = vmatmul.f32.gmra.mxu1 %v1667_v55  ;;  %v4531_v8 = vand.u32 4294901760, %v2075_v34 }
 0x1ec   :  { %v4541_v7 = vsub.f32 %v2075_v34, %v4531_v8  ;;  %2089 = vmatpush.msra.mxu2 %v4531_v8  ;;  %2285 = vmatpush.msrb.mxu1 %v4531_v8  ;;  %v4717_v34 = vsub.f32 %v2066_v43, %v4696_v49 }
 0x1ee   :  { %2091 = vmatpush.msra.mxu2 %v4543_v25  ;;  %2233 = vmatpush.msrb.mxu0 %v4541_v7  ;;  %5184 = vst [vmem:[#allocation3_spill] sm:$0xff] %v4717_v34  ;;  %v4738_v59 = vand.u32 4294901760, %v4717_v34 }
 0x1ef   :  { %2287 = vmatpush.msrb.mxu1 %v4543_v25 }
 0x1f0   :  { %2093 = vmatpush.msra.mxu2 %v4558_v10  ;;  %2236 = vmatpush.msrb.mxu0 %v4556_v48  ;;  %v2190_v41 = vsub.f32 %v4717_v34, %v4738_v59 }
 0x1f1   :  { %2289 = vmatpush.msrb.mxu1 %v4558_v10 }
 0x1f2   :  { %2000 = vmatmul.f32.gmra.mxu0 %v1667_v55  ;;  %2053 = vmatmul.f32.gmra.mxu1 %v1675_v24  ;;  %v4553_v55 = vand.u32 4294901760, %v4541_v7  ;;  %v4776_v23 = vand.u32 4294901760, %v2190_v41 }
 0x1f3   :  { %2095 = vmatpush.msra.mxu2 %v4578_v37  ;;  %2239 = vmatpush.msrb.mxu0 %v4576_v22 }
 0x1f4   :  { %v2136_v56 = vsub.f32 %v4541_v7, %v4553_v55  ;;  %2291 = vmatpush.msrb.mxu1 %v4578_v37 }
 0x1f5   :  { %2242 = vmatpush.msrb.mxu0 %v4595_v18  ;;  %2097 = vmatpush.msra.mxu2 %v4599_v17 }
 0x1f6   :  { %v4587_v15 = vand.u32 4294901760, %v2136_v56  ;;  %2293 = vmatpush.msrb.mxu1 %v4599_v17  ;;  %v4730_v56 = vand.u32 4294901760, %v2064_v62 }
 0x1f7   :  { %2099 = vmatpush.msra.mxu2 %v4613_v5  ;;  %2245 = vmatpush.msrb.mxu0 %v4617_v47 }
 0x1f8   :  { %2138 = vmatpush.msra.mxu3 %v4587_v15  ;;  %2295 = vmatpush.msrb.mxu1 %v4613_v5 }
 0x1f9   :  { %2248 = vmatpush.msrb.mxu0 %v4632_v42 }
 0x1fa   :  { %2004 = vmatmul.f32.gmra.mxu0 %v1675_v24  ;;  %2057 = vmatmul.f32.gmra.mxu1 %v1683_v32  ;;  %v2069_v24 = vld [vmem:[%s5021_s9 + $0x40] sm:$0xff] }
 0x1fb   :  { %2144 = vmatpush.msra.mxu3 %v4606_v61  ;;  %v4634_v52 = vand.u32 4294901760, %v2069_v24 }
 0x1fd   :  { %2150 = vmatpush.msra.mxu3 %v4627_v16  ;;  %v4653_v6 = vsub.f32 %v2069_v24, %v4634_v52  ;;  %2101 = vmatpush.msra.mxu2 %v4634_v52  ;;  %v4748_v24 = vsub.f32 %v2064_v62, %v4730_v56  ;;  %v2061_v62 = vld [vmem:[%s5021_s9] sm:$0xff] }
 0x1fe   :  { %2297 = vmatpush.msrb.mxu1 %v4634_v52  ;;  %v4797_v41 = vand.u32 4294901760, %v2061_v62 }
 0x1ff   :  { %5180 = vst [vmem:[#allocation8_spill] sm:$0xff] %v4653_v6  ;;  %2156 = vmatpush.msra.mxu3 %v4647_v63  ;;  %v4669_v53 = vand.u32 4294901760, %v4653_v6  ;;  %2103 = vmatpush.msra.mxu2 %v4655_v44  ;;  %v4766_v43 = vand.u32 4294901760, %v4748_v24 }
 0x200   :  { %2251 = vmatpush.msrb.mxu0 %v4653_v6  ;;  %2299 = vmatpush.msrb.mxu1 %v4655_v44  ;;  %5186 = vst [vmem:[#allocation7_spill] sm:$0xff] %v4748_v24 }
 0x201   :  { %5181 = vst [vmem:[#allocation11_spill] sm:$0xff] %v4669_v53  ;;  %v2172_v4 = vsub.f32 %v4653_v6, %v4669_v53  ;;  %2162 = vmatpush.msra.mxu3 %v4677_v39  ;;  %2105 = vmatpush.msra.mxu2 %v4674_v30 }
 0x202   :  { %2008 = vmatmul.f32.gmra.mxu0 %v1683_v32  ;;  %v2065_v32 = vld [vmem:[%s5021_s9 + $0x20] sm:$0xff]  ;;  %2301 = vmatpush.msrb.mxu1 %v4674_v30 }
 0x203   :  { %v4704_v60 = vand.u32 4294901760, %v2172_v4  ;;  %v4708_v21 = vand.u32 4294901760, %v2065_v32  ;;  %2254 = vmatpush.msrb.mxu0 %v4672_v40  ;;  %2168 = vmatpush.msra.mxu3 %v4684_v20  ;;  %v4769_v4 = vsub.f32 %v2063_v35, %v4750_v46 }
 0x204   :  { %2107 = vmatpush.msra.mxu2 %v4696_v49  ;;  %2303 = vmatpush.msrb.mxu1 %v4696_v49 }
 0x205   :  { %v4728_v28 = vsub.f32 %v2065_v32, %v4708_v21  ;;  %2257 = vmatpush.msrb.mxu0 %v4694_v31  ;;  %2174 = vmatpush.msra.mxu3 %v4704_v60  ;;  %5187 = vst [vmem:[#allocation5_spill] sm:$0xff] %v4769_v4  ;;  %v4771_v32 = vand.u32 4294901760, %v2062_v19 }
 0x206   :  { %2109 = vmatpush.msra.mxu2 %v4708_v21  ;;  %2305 = vmatpush.msrb.mxu1 %v4708_v21 }
 0x207   :  { %5185 = vst [vmem:[#allocation13_spill] sm:$0xff] %v4728_v28  ;;  %v4745_v57 = vand.u32 4294901760, %v4728_v28  ;;  %2260 = vmatpush.msrb.mxu0 %v4717_v34  ;;  %2180 = vmatpush.msra.mxu3 %v4725_v27  ;;  %v2202_v34 = vsub.f32 %v4748_v24, %v4766_v43  ;;  %v4792_v31 = vsub.f32 %v2062_v19, %v4771_v32 }
 0x208   :  { %2111 = vmatpush.msra.mxu2 %v4730_v56  ;;  %2307 = vmatpush.msrb.mxu1 %v4730_v56 }
 0x209   :  { %v2196_v36 = vsub.f32 %v4728_v28, %v4745_v57  ;;  %2263 = vmatpush.msrb.mxu0 %v4728_v28  ;;  %2186 = vmatpush.msra.mxu3 %v4755_v3  ;;  %v4789_v28 = vand.u32 4294901760, %v4769_v4  ;;  %5188 = vst [vmem:[#allocation15_spill] sm:$0xff] %v4792_v31  ;;  %v4802_v40 = vand.u32 4294901760, %v2202_v34  ;;  %v4807_v19 = vand.u32 4294901760, %v4792_v31 }
 0x20a   :  { %2113 = vmatpush.msra.mxu2 %v4750_v46  ;;  %2309 = vmatpush.msrb.mxu1 %v4750_v46 }
 0x20b   :  { %v4784_v35 = vand.u32 4294901760, %v2196_v36  ;;  %2266 = vmatpush.msrb.mxu0 %v4748_v24  ;;  %2192 = vmatpush.msra.mxu3 %v4776_v23  ;;  %v2208_v6 = vsub.f32 %v4769_v4, %v4789_v28  ;;  %v4813_v24 = vsub.f32 %v2061_v62, %v4797_v41  ;;  %v2214_v34 = vsub.f32 %v4792_v31, %v4807_v19 }
 0x20c   :  { %2115 = vmatpush.msra.mxu2 %v4771_v32  ;;  %2311 = vmatpush.msrb.mxu1 %v4771_v32 }
 0x20d   :  { %2269 = vmatpush.msrb.mxu0 %v4769_v4  ;;  %2198 = vmatpush.msra.mxu3 %v4784_v35  ;;  %5189 = vst [vmem:[#allocation12_spill] sm:$0xff] %v4813_v24  ;;  %v4816_v42 = vand.u32 4294901760, %v2208_v6  ;;  %v4824_v4 = vand.u32 4294901760, %v4813_v24  ;;  %v4827_v62 = vand.u32 4294901760, %v2214_v34 }
 0x20e   :  { %2117 = vmatpush.msra.mxu2 %v4797_v41  ;;  %2313 = vmatpush.msrb.mxu1 %v4797_v41 }
 0x20f   :  { %2272 = vmatpush.msrb.mxu0 %v4792_v31  ;;  %2204 = vmatpush.msra.mxu3 %v4802_v40  ;;  %v2220_v6 = vsub.f32 %v4813_v24, %v4824_v4 }
 0x210   :  { %2324 = vmatpush.msrb.mxu2 %v4534_v2  ;;  %2492 = vmatpush.msra.mxu1 %v4562_v50 }
 0x211   :  { %2275 = vmatpush.msrb.mxu0 %v4813_v24  ;;  %2210 = vmatpush.msra.mxu3 %v4816_v42  ;;  %v4838_v34 = vand.u32 4294901760, %v2220_v6 }
 0x212   :  { %2328 = vmatpush.msrb.mxu2 %v4553_v55  ;;  %2498 = vmatpush.msra.mxu1 %v4587_v15 }
 0x213   :  { %2447 = vmatpush.msra.mxu0 %v4521_v13  ;;  %2216 = vmatpush.msra.mxu3 %v4827_v62 }
 0x214   :  { %2332 = vmatpush.msrb.mxu2 %v4573_v54  ;;  %2504 = vmatpush.msra.mxu1 %v4606_v61 }
 0x215   :  { %2449 = vmatpush.msra.mxu0 %v4531_v8  ;;  %2222 = vmatpush.msra.mxu3 %v4838_v34 }
 0x216   :  { %2336 = vmatpush.msrb.mxu2 %v4592_v12  ;;  %2510 = vmatpush.msra.mxu1 %v4627_v16  ;;  %v2841_v16 = vld [vmem:[%s5020_s6] ss:$0 sm:$0xff] }
 0x217   :  { %2391 = vmatpush.msrb.mxu3 %v4521_v13  ;;  %2451 = vmatpush.msra.mxu0 %v4543_v25 }
 0x218   :  { %2340 = vmatpush.msrb.mxu2 %v4611_v33  ;;  %2516 = vmatpush.msra.mxu1 %v4647_v63 }
 0x219   :  { %2393 = vmatpush.msrb.mxu3 %v4531_v8  ;;  %2453 = vmatpush.msra.mxu0 %v4558_v10 }
 0x21a   :  { %2344 = vmatpush.msrb.mxu2 %v4637_v38  ;;  %2522 = vmatpush.msra.mxu1 %v4677_v39 }
 0x21b   :  { %2395 = vmatpush.msrb.mxu3 %v4543_v25  ;;  %2455 = vmatpush.msra.mxu0 %v4578_v37 }
 0x21c   :  { %2348 = vmatpush.msrb.mxu2 %v4650_v0  ;;  %2528 = vmatpush.msra.mxu1 %v4684_v20 }
 0x21d   :  { %2397 = vmatpush.msrb.mxu3 %v4558_v10  ;;  %2457 = vmatpush.msra.mxu0 %v4599_v17 }
 0x21e   :  { %2352 = vmatpush.msrb.mxu2 %v4669_v53  ;;  %2534 = vmatpush.msra.mxu1 %v4704_v60 }
 0x21f   :  { %2399 = vmatpush.msrb.mxu3 %v4578_v37  ;;  %2459 = vmatpush.msra.mxu0 %v4613_v5 }
 0x220   :  { %2356 = vmatpush.msrb.mxu2 %v4689_v58  ;;  %2540 = vmatpush.msra.mxu1 %v4725_v27 }
 0x221   :  { %2401 = vmatpush.msrb.mxu3 %v4599_v17  ;;  %2461 = vmatpush.msra.mxu0 %v4634_v52 }
 0x222   :  { %2360 = vmatpush.msrb.mxu2 %v4714_v14  ;;  %2546 = vmatpush.msra.mxu1 %v4755_v3 }
 0x223   :  { %2403 = vmatpush.msrb.mxu3 %v4613_v5  ;;  %2463 = vmatpush.msra.mxu0 %v4655_v44 }
 0x224   :  { %v4568_v51 = vpop.f32.mrf.mxu1  ;;  %2364 = vmatpush.msrb.mxu2 %v4738_v59  ;;  %2552 = vmatpush.msra.mxu1 %v4776_v23 }
 0x225   :  { %2405 = vmatpush.msrb.mxu3 %v4634_v52  ;;  %2465 = vmatpush.msra.mxu0 %v4674_v30 }
 0x226   :  { %2368 = vmatpush.msrb.mxu2 %v4745_v57  ;;  %2558 = vmatpush.msra.mxu1 %v4784_v35 }
 0x227   :  { %2407 = vmatpush.msrb.mxu3 %v4655_v44  ;;  %2467 = vmatpush.msra.mxu0 %v4696_v49 }
 0x228   :  { %2372 = vmatpush.msrb.mxu2 %v4766_v43  ;;  %2564 = vmatpush.msra.mxu1 %v4802_v40 }
 0x229   :  { %2409 = vmatpush.msrb.mxu3 %v4674_v30  ;;  %2469 = vmatpush.msra.mxu0 %v4708_v21 }
 0x22a   :  { %2376 = vmatpush.msrb.mxu2 %v4789_v28  ;;  %2570 = vmatpush.msra.mxu1 %v4816_v42 }
 0x22b   :  { %2411 = vmatpush.msrb.mxu3 %v4696_v49  ;;  %2471 = vmatpush.msra.mxu0 %v4730_v56 }
 0x22c   :  { %v4624_v11 = vpop.f32.mrf.mxu0  ;;  %v1856_v47 = vpop.f32.mrf.mxu2  ;;  %2380 = vmatpush.msrb.mxu2 %v4807_v19  ;;  %2576 = vmatpush.msra.mxu1 %v4827_v62 }
 0x22d   :  { %v1666_v24 = vadd.f32 %v2841_v16, %v4624_v11  ;;  %2413 = vmatpush.msrb.mxu3 %v4708_v21  ;;  %2473 = vmatpush.msra.mxu0 %v4750_v46 }
 0x22e   :  { %v1910_v15 = vpop.f32.mrf.mxu3  ;;  %2384 = vmatpush.msrb.mxu2 %v4824_v4  ;;  %2582 = vmatpush.msra.mxu1 %v4838_v34 }
 0x22f   :  { %v1791_v11 = vadd.f32 %v4568_v51, %v1666_v24  ;;  %2415 = vmatpush.msrb.mxu3 %v4730_v56  ;;  %2475 = vmatpush.msra.mxu0 %v4771_v32 }
 0x231   :  { %v1857_v51 = vadd.f32 %v1856_v47, %v1791_v11  ;;  %2417 = vmatpush.msrb.mxu3 %v4750_v46  ;;  %2477 = vmatpush.msra.mxu0 %v4797_v41 }
 0x233   :  { %v1911_v47 = vadd.f32 %v1910_v15, %v1857_v51  ;;  %2419 = vmatpush.msrb.mxu3 %v4771_v32 }
 0x235   :  { %2421 = vmatpush.msrb.mxu3 %v4797_v41 }
 0x237   :  { %v4644_v1 = vpop.f32.mrf.mxu1 }
 0x23f   :  { %v4702_v29 = vpop.f32.mrf.mxu0  ;;  %v1861_v6 = vpop.f32.mrf.mxu2 }
 0x240   :  { %v1674_v63 = vadd.f32 %v2841_v16, %v4702_v29 }
 0x241   :  { %v1916_v0 = vpop.f32.mrf.mxu3 }
 0x242   :  { %v1795_v20 = vadd.f32 %v4644_v1, %v1674_v63 }
 0x244   :  { %v4723_v9 = vpop.f32.mrf.mxu1  ;;  %v1862_v1 = vadd.f32 %v1861_v6, %v1795_v20 }
 0x24c   :  { %v4782_v26 = vpop.f32.mrf.mxu0 }
 0x24d   :  { %v1682_v39 = vadd.f32 %v2841_v16, %v4782_v26  ;;  %v1866_v26 = vpop.f32.mrf.mxu2 }
 0x24e   :  { %v1922_v24 = vpop.f32.mrf.mxu3 }
 0x24f   :  { %v1799_v60 = vadd.f32 %v4723_v9, %v1682_v39 }
 0x251   :  { %v1867_v9 = vadd.f32 %v1866_v26, %v1799_v60 }
 0x253   :  { %v1923_v35 = vadd.f32 %v1922_v24, %v1867_v9 }
 0x257   :  { %v4800_v36 = vpop.f32.mrf.mxu1 }
 0x25f   :  { %v1689_v31 = vpop.f32.mrf.mxu0  ;;  %v4845_v50 = vpop.f32.mrf.mxu1 }
 0x260   :  { %v1690_v27 = vadd.f32 %v2841_v16, %v1689_v31  ;;  %v1917_v31 = vadd.f32 %v1916_v0, %v1862_v1  ;;  %v1871_v0 = vpop.f32.mrf.mxu2 }
 0x261   :  { %v1928_v42 = vpop.f32.mrf.mxu3 }
 0x262   :  { %v1803_v3 = vadd.f32 %v4800_v36, %v1690_v27 }
 0x264   :  { %v1872_v40 = vadd.f32 %v1871_v0, %v1803_v3 }
 0x266   :  { %v1929_v39 = vadd.f32 %v1928_v42, %v1872_v40 }
 0x267   :  { %v4855_v61 = vpop.f32.mrf.mxu0  ;;  %v2050_v53 = vpop.f32.mrf.mxu1 }
 0x268   :  { %v1998_v36 = vadd.f32 %v4855_v61, %v1911_v47 }
 0x26a   :  { %v4915_v20 = vadd.f32 %v4845_v50, %v1998_v36 }
 0x26f   :  { %v2001_v29 = vpop.f32.mrf.mxu0  ;;  %v2054_v23 = vpop.f32.mrf.mxu1 }
 0x270   :  { %v2002_v6 = vadd.f32 %v2001_v29, %v1917_v31 }
 0x272   :  { %v4909_v15 = vadd.f32 %v2050_v53, %v2002_v6 }
 0x274   :  { %v2077_v53 = vadd.f32 %v4909_v15, %v4915_v20 }
 0x277   :  { %v2005_v16 = vpop.f32.mrf.mxu0  ;;  %v2058_v29 = vpop.f32.mrf.mxu1 }
 0x278   :  { %v2006_v63 = vadd.f32 %v2005_v16, %v1923_v35 }
 0x27a   :  { %v4917_v61 = vadd.f32 %v2054_v23, %v2006_v63 }
 0x27c   :  { %v2078_v11 = vadd.f32 %v2077_v53, %v4917_v61 }
 0x27f   :  { %v2009_v62 = vpop.f32.mrf.mxu0 }
 0x280   :  { %v2010_v34 = vadd.f32 %v2009_v62, %v1929_v39 }
 0x282   :  { %v4925_v60 = vadd.f32 %v2058_v29, %v2010_v34 }
 0x284   :  { %v2079_v50 = vadd.f32 %v2078_v11, %v4925_v60 }
 0x286   :  { %v2080_v26 = vrot.slane %v2079_v50, 4 }
 0x288   :  { %v2081_v1 = vadd.f32 %v2080_v26, %v2079_v50 }
 0x28a   :  { %v2082_v27 = vrot.slane %v2081_v1, 2 }
 0x28c   :  { %v2083_v51 = vadd.f32 %v2082_v27, %v2081_v1 }
 0x28e   :  { %v2084_v9 = vrot.slane %v2083_v51, 1 }
 0x290   :  { %v2085_v24 = vadd.f32 %v2084_v9, %v2083_v51 }
 0x292   :  { %v2118_v31 = vand.u32 4294901760, %v2085_v24 }
 0x294   :  { %v2119_v3 = vsub.f32 %v2085_v24, %v2118_v31  ;;  %2224 = vmatmul.f32.vlgmr.msra.gmra.mxu3 %v2118_v31 }
 0x295   :  { %2643 = vmatpush.msra.mxu3 %v4521_v13 }
 0x296   :  { %2278 = vmatmul.f32.vlgmr.msrb.gmra.mxu0 %v2119_v3  ;;  %v2120_v23 = vand.u32 4294901760, %v2119_v3 }
 0x297   :  { %2645 = vmatpush.msra.mxu3 %v4531_v8  ;;  %2684 = vmatpush.msrb.mxu0 %v4534_v2  ;;  %v5193_v2 = vld [vmem:[#allocation11_spill] sm:$0xff] }
 0x298   :  { %2317 = vmatmul.f32.vlgmr.msrb.gmra.mxu1 %v2120_v23  ;;  %v2121_v16 = vsub.f32 %v2119_v3, %v2120_v23 }
 0x299   :  { %2647 = vmatpush.msra.mxu3 %v4543_v25  ;;  %2751 = vmatpush.msrb.mxu1 %v4521_v13  ;;  %v5190_v13 = vld [vmem:[#allocation6_spill] sm:$0xff] }
 0x29a   :  { %v2122_v47 = vand.u32 4294901760, %v2121_v16  ;;  %2688 = vmatpush.msrb.mxu0 %v4553_v55  ;;  %v5196_v55 = vld [vmem:[#allocation14_spill] sm:$0xff] }
 0x29b   :  { %2649 = vmatpush.msra.mxu3 %v4558_v10  ;;  %2753 = vmatpush.msrb.mxu1 %v4531_v8  ;;  %v5192_v8 = vld [vmem:[#allocation4_spill] sm:$0xff] }
 0x29c   :  { %2123 = vmatmul.f32.vlgmr.msra.gmra.mxu2 %v2122_v47  ;;  %2423 = vmatmul.f32.vlgmr.msrb.gmra.mxu3 %v2118_v31 }
 0x29d   :  { %2590 = vmatpush.msra.mxu2 %v4524_v45  ;;  %2651 = vmatpush.msra.mxu3 %v4578_v37  ;;  %v5191_v45 = vld [vmem:[#allocation9_spill] sm:$0xff] }
 0x29e   :  { %2755 = vmatpush.msrb.mxu1 %v4543_v25  ;;  %2692 = vmatpush.msrb.mxu0 %v4573_v54  ;;  %v5195_v25 = vld [vmem:[#allocation10_spill] sm:$0xff]  ;;  %v5199_v54 = vld [vmem:[#allocation7_spill] sm:$0xff] }
 0x29f   :  { %2593 = vmatpush.msra.mxu2 %v4541_v7  ;;  %2653 = vmatpush.msra.mxu3 %v4599_v17  ;;  %v5194_v7 = vld [vmem:[#allocation8_spill] sm:$0xff] }
 0x2a0   :  { %2757 = vmatpush.msrb.mxu1 %v4558_v10  ;;  %2696 = vmatpush.msrb.mxu0 %v4592_v12  ;;  %v5198_v10 = vld [vmem:[#allocation13_spill] sm:$0xff]  ;;  %v5202_v12 = vld [vmem:[#allocation12_spill] sm:$0xff] }
 0x2a1   :  { %2596 = vmatpush.msra.mxu2 %v4556_v48  ;;  %2655 = vmatpush.msra.mxu3 %v4613_v5  ;;  %v5197_v48 = vld [vmem:[#allocation3_spill] sm:$0xff] }
 0x2a2   :  { %2759 = vmatpush.msrb.mxu1 %v4578_v37  ;;  %2700 = vmatpush.msrb.mxu0 %v4611_v33  ;;  %v5201_v37 = vld [vmem:[#allocation15_spill] sm:$0xff] }
 0x2a3   :  { %2599 = vmatpush.msra.mxu2 %v4576_v22  ;;  %2657 = vmatpush.msra.mxu3 %v4634_v52  ;;  %v5200_v22 = vld [vmem:[#allocation5_spill] sm:$0xff] }
 0x2a4   :  { %2386 = vmatmul.f32.vlgmr.msrb.gmra.mxu2 %v2118_v31  ;;  %2761 = vmatpush.msrb.mxu1 %v4599_v17 }
 0x2a5   :  { %2602 = vmatpush.msra.mxu2 %v4595_v18  ;;  %2659 = vmatpush.msra.mxu3 %v4655_v44 }
 0x2a6   :  { %2763 = vmatpush.msrb.mxu1 %v4613_v5  ;;  %2704 = vmatpush.msrb.mxu0 %v4637_v38 }
 0x2a7   :  { %2605 = vmatpush.msra.mxu2 %v5190_v13  ;;  %2661 = vmatpush.msra.mxu3 %v4674_v30 }
 0x2a8   :  { %2765 = vmatpush.msrb.mxu1 %v4634_v52  ;;  %2708 = vmatpush.msrb.mxu0 %v5191_v45 }
 0x2a9   :  { %2608 = vmatpush.msra.mxu2 %v5192_v8  ;;  %2663 = vmatpush.msra.mxu3 %v4696_v49  ;;  %v2788_v8 = vld [vmem:[%s5023_s7] sm:$0x1] }
 0x2aa   :  { %2767 = vmatpush.msrb.mxu1 %v4655_v44  ;;  %2712 = vmatpush.msrb.mxu0 %v5193_v2 }
 0x2ab   :  { %2611 = vmatpush.msra.mxu2 %v5194_v7  ;;  %2665 = vmatpush.msra.mxu3 %v4708_v21 }
 0x2ac   :  { %2769 = vmatpush.msrb.mxu1 %v4674_v30  ;;  %2716 = vmatpush.msrb.mxu0 %v4689_v58 }
 0x2ad   :  { %2614 = vmatpush.msra.mxu2 %v5195_v25  ;;  %2667 = vmatpush.msra.mxu3 %v4730_v56 }
 0x2ae   :  { %2771 = vmatpush.msrb.mxu1 %v4696_v49  ;;  %2720 = vmatpush.msrb.mxu0 %v4714_v14 }
 0x2af   :  { %2617 = vmatpush.msra.mxu2 %v5196_v55  ;;  %2669 = vmatpush.msra.mxu3 %v4750_v46 }
 0x2b0   :  { %2773 = vmatpush.msrb.mxu1 %v4708_v21  ;;  %2724 = vmatpush.msrb.mxu0 %v4738_v59 }
 0x2b1   :  { %2620 = vmatpush.msra.mxu2 %v5197_v48  ;;  %2671 = vmatpush.msra.mxu3 %v4771_v32  ;;  %v2842_v48 = vld [vmem:[%s5022_s8] ss:$0 sm:$0xff] }
 0x2b2   :  { %2775 = vmatpush.msrb.mxu1 %v4730_v56  ;;  %2728 = vmatpush.msrb.mxu0 %v4745_v57 }
 0x2b3   :  { %2623 = vmatpush.msra.mxu2 %v5198_v10  ;;  %2673 = vmatpush.msra.mxu3 %v4797_v41 }
 0x2b4   :  { %2777 = vmatpush.msrb.mxu1 %v4750_v46  ;;  %2732 = vmatpush.msrb.mxu0 %v4766_v43 }
 0x2b5   :  { %2626 = vmatpush.msra.mxu2 %v5199_v54 }
 0x2b6   :  { %2779 = vmatpush.msrb.mxu1 %v4771_v32  ;;  %2736 = vmatpush.msrb.mxu0 %v4789_v28 }
 0x2b7   :  { %2629 = vmatpush.msra.mxu2 %v5200_v22 }
 0x2b8   :  { %2781 = vmatpush.msrb.mxu1 %v4797_v41  ;;  %2740 = vmatpush.msrb.mxu0 %v4807_v19 }
 0x2b9   :  { %2632 = vmatpush.msra.mxu2 %v5201_v37 }
 0x2ba   :  { %2744 = vmatpush.msrb.mxu0 %v4824_v4 }
 0x2bb   :  { %2635 = vmatpush.msra.mxu2 %v5202_v12 }
 0x313   :  { %v2279_v5 = vpop.f32.mrf.mxu0 }
 0x315   :  { %v2318_v38 = vpop.f32.mrf.mxu1 }
 0x317   :  { %v2225_v18 = vpop.f32.mrf.mxu3 }
 0x31f   :  { %v2124_v17 = vpop.f32.mrf.mxu2  ;;  %v2424_v49 = vpop.f32.mrf.mxu3 }
 0x320   :  { %v2226_v33 = vadd.f32 %v2225_v18, %v2124_v17 }
 0x322   :  { %v2280_v52 = vadd.f32 %v2279_v5, %v2226_v33 }
 0x324   :  { %v2319_v44 = vadd.f32 %v2318_v38, %v2280_v52 }
 0x327   :  { %v2387_v30 = vpop.f32.mrf.mxu2 }
 0x328   :  { %v2388_v58 = vadd.f32 %v2387_v30, %v2319_v44 }
 0x32a   :  { %v2425_v21 = vadd.f32 %v2424_v49, %v2388_v58 }
 0x32c   :  { %v2427_v14 = vmul.f32 0.001953125, %v2425_v21 }
 0x32e   :  { %v2428_v28 = vperm.slane %v2427_v14, 0 }
 0x330   :  { %v2429_v56 = vsub.f32 %v4915_v20, %v2428_v28  ;;  %v2430_v59 = vsub.f32 %v4909_v15, %v2428_v28  ;;  %v2431_v57 = vsub.f32 %v4917_v61, %v2428_v28  ;;  %v2432_v46 = vsub.f32 %v4925_v60, %v2428_v28 }
 0x332   :  { %v2433_v43 = vmul.f32 %v2429_v56, %v2429_v56  ;;  %v2434_v4 = vmul.f32 %v2430_v59, %v2430_v59  ;;  %v2435_v32 = vmul.f32 %v2431_v57, %v2431_v57  ;;  %v2436_v19 = vmul.f32 %v2432_v46, %v2432_v46 }
 0x334   :  { %v2437_v41 = vadd.f32 %v2434_v4, %v2433_v43 }
 0x336   :  { %v2438_v35 = vadd.f32 %v2437_v41, %v2435_v32 }
 0x338   :  { %v2439_v6 = vadd.f32 %v2438_v35, %v2436_v19 }
 0x33a   :  { %v2440_v0 = vrot.slane %v2439_v6, 4 }
 0x33c   :  { %v2441_v40 = vadd.f32 %v2440_v0, %v2439_v6 }
 0x33e   :  { %v2442_v36 = vrot.slane %v2441_v40, 2 }
 0x340   :  { %v2443_v63 = vadd.f32 %v2442_v36, %v2441_v40 }
 0x342   :  { %v2444_v42 = vrot.slane %v2443_v63, 1 }
 0x344   :  { %v2445_v39 = vadd.f32 %v2444_v42, %v2443_v63 }
 0x346   :  { %v2478_v20 = vand.u32 4294901760, %v2445_v39 }
 0x348   :  { %2584 = vmatmul.f32.vlgmr.msra.gmra.mxu1 %v2478_v20  ;;  %v2479_v15 = vsub.f32 %v2445_v39, %v2478_v20 }
 0x34a   :  { %2638 = vmatmul.f32.vlgmr.msra.gmra.mxu2 %v2479_v15  ;;  %v2480_v61 = vand.u32 4294901760, %v2479_v15 }
 0x34c   :  { %2677 = vmatmul.f32.vlgmr.msra.gmra.mxu3 %v2480_v61  ;;  %v2481_v62 = vsub.f32 %v2479_v15, %v2480_v61 }
 0x34e   :  { %v2482_v53 = vand.u32 4294901760, %v2481_v62 }
 0x350   :  { %2483 = vmatmul.f32.vlgmr.msra.gmra.mxu0 %v2482_v53  ;;  %2783 = vmatmul.f32.vlgmr.msrb.gmra.mxu1 %v2478_v20 }
 0x358   :  { %2746 = vmatmul.f32.vlgmr.msrb.gmra.mxu0 %v2478_v20 }
 0x3c5   :  { %v2585_v34 = vpop.f32.mrf.mxu1 }
 0x3cd   :  { %v2484_v29 = vpop.f32.mrf.mxu0  ;;  %v2639_v60 = vpop.f32.mrf.mxu2 }
 0x3ce   :  { %v2586_v11 = vadd.f32 %v2585_v34, %v2484_v29  ;;  %v2784_v9 = vpop.f32.mrf.mxu1 }
 0x3cf   :  { %v2678_v26 = vpop.f32.mrf.mxu3 }
 0x3d0   :  { %v2640_v50 = vadd.f32 %v2639_v60, %v2586_v11 }
 0x3d2   :  { %v2679_v1 = vadd.f32 %v2678_v26, %v2640_v50 }
 0x3d5   :  { %v2747_v27 = vpop.f32.mrf.mxu0 }
 0x3d6   :  { %v2748_v51 = vadd.f32 %v2747_v27, %v2679_v1 }
 0x3d8   :  { %v2785_v24 = vadd.f32 %v2784_v9, %v2748_v51 }
 0x3da   :  { %v2787_v31 = vmul.f32 0.001953125, %v2785_v24 }
 0x3dc   :  { %v2789_v3 = vadd.f32 1e-05, %v2787_v31 }
 0x3de   :  { %2843 = vrsqrt.f32 %v2789_v3  ;;  %vm2796_vm5 = vweird.f32 %v2789_v3 }
 0x3e4   :  { %v2844_v23 = vpop.eup %2843 }
 0x3e5   :  { %v2791_v16 = vmul.f32 %v2844_v23, %v2789_v3  ;;  %vm2797_vm4 = vweird.f32 %v2844_v23 }
 0x3e6   :  { %vm2798_vm6 = vmor %vm2796_vm5, %vm2797_vm4 }
 0x3e7   :  { %v2792_v47 = vmul.f32 %v2844_v23, %v2791_v16 }
 0x3e9   :  { %v2793_v13 = vmul.f32 0.5, %v2792_v47 }
 0x3eb   :  { %v2794_v45 = vsub.f32 1.5, %v2793_v13 }
 0x3ed   :  { %v2795_v2 = vmul.f32 %v2844_v23, %v2794_v45 }
 0x3ef   :  { %v2799_v7 = vsel %vm2798_vm6, %v2844_v23, %v2795_v2 }
 0x3f0   :  { %v2800_v25 = vmul.f32 %v2799_v7, %v2788_v8 }
 0x3f2   :  { %v2802_v55 = vperm.slane %v2800_v25, 0 }
 0x3f4   :  { %v2804_v10 = vmul.f32 %v2802_v55, %v2429_v56  ;;  %v2805_v54 = vmul.f32 %v2802_v55, %v2430_v59  ;;  %v2806_v22 = vmul.f32 %v2802_v55, %v2431_v57  ;;  %v2807_v37 = vmul.f32 %v2802_v55, %v2432_v46 }
 0x3f6   :  { %v2812_v12 = vadd.f32 %v2842_v48, %v2804_v10  ;;  %v2813_v18 = vadd.f32 %v2842_v48, %v2805_v54  ;;  %v2814_v17 = vadd.f32 %v2842_v48, %v2806_v22  ;;  %v2815_v33 = vadd.f32 %v2842_v48, %v2807_v37 }
 0x3f8   :  { %v2816_v5 = vmax.f32 %v2812_v12, 0.0  ;;  %v2817_v52 = vmax.f32 %v2813_v18, 0.0  ;;  %v2818_v38 = vmax.f32 %v2814_v17, 0.0  ;;  %v2819_v44 = vmax.f32 %v2815_v33, 0.0 }
 0x3fa   :  { %2820 = vst [vmem:[%s5024_s10] sm:$0xff] %v2816_v5 }
 0x3fb   :  { %2821 = vst [vmem:[%s5024_s10 + $0x8] sm:$0xff] %v2817_v52 }
 0x3fc   :  { %2822 = vst [vmem:[%s5024_s10 + $0x10] sm:$0xff] %v2818_v38 }
 0x3fd   :  { %2823 = vst [vmem:[%s5024_s10 + $0x18] sm:$0xff] %v2819_v44 }

</bundles_post_ra>
